<compile_context>
chip_gen: v7x
topology: tpu7x:2x2x1
jax: 0.10.0
libtpu: 0.0.40
codegen_flags: <defaults>
</compile_context>

<pallas_src>
import functools

import jax
import jax.numpy as jnp
from jax.experimental import pallas as pl
from jax.experimental.pallas import tpu as pltpu

# ---- small synthetic BERT config -------------------------------------------
VOCAB = 100
MAX_POS = 64
TYPE_VOCAB = 2
SEQ = 8
HIDDEN = 32
HEADS = 4
HEAD_DIM = HIDDEN // HEADS
INTER = 64
LAYERS = 2
EPS = 1e-12                       # BERT LayerNorm eps
MXU_DTYPE = jnp.bfloat16          # matmul input dtype (set to jnp.float32 for exact f32)

_VMEM = pl.BlockSpec(memory_space=pltpu.MemorySpace.VMEM)
_SMEM = pl.BlockSpec(memory_space=pltpu.MemorySpace.SMEM)


# ---- in-kernel helpers -------------------------------------------------------
def _layernorm(x, g, b):
    mu = jnp.mean(x, axis=-1, keepdims=True)
    var = jnp.mean((x - mu) ** 2, axis=-1, keepdims=True)
    return (x - mu) * jax.lax.rsqrt(var + EPS) * g + b


def _mm(a, b):
    """MXU matmul: bf16 operands, f32 accumulation."""
    return jnp.dot(a.astype(MXU_DTYPE), b.astype(MXU_DTYPE),
                   preferred_element_type=jnp.float32)


# ---- the single fused kernel -------------------------------------------------
def bert_kernel(ids_ref,                                   # SMEM [SEQ] int32
                word_emb_ref, pos_emb_ref, type_emb_ref,   # embeddings
                emb_ln_g_ref, emb_ln_b_ref,
                wqkv_ref, bqkv_ref, wo_ref, bo_ref,        # per-layer stacks [L, ...]
                ln1_g_ref, ln1_b_ref,
                wi_ref, bi_ref, wo2_ref, bo2_ref,
                ln2_g_ref, ln2_b_ref,
                o_ref):                                    # [1, HIDDEN] f32
    # ---- embedding lookup as a one-hot MXU matmul (no XLA gather, no extra launch)
    row_ids = jax.lax.broadcasted_iota(jnp.int32, (SEQ, VOCAB), 0)
    col_ids = jax.lax.broadcasted_iota(jnp.int32, (SEQ, VOCAB), 1)
    tok_mat = jnp.zeros((SEQ, VOCAB), jnp.int32)
    for i in range(SEQ):                                   # SEQ scalar SMEM reads
        tok_mat = jnp.where(row_ids == i, ids_ref[i], tok_mat)
    onehot = (col_ids == tok_mat).astype(jnp.float32)      # [SEQ, VOCAB]

    emb = _mm(onehot, word_emb_ref[...])                   # [SEQ, HIDDEN] f32
    emb = emb + pos_emb_ref[0:SEQ, :] + type_emb_ref[0:1, :]
    x = _layernorm(emb, emb_ln_g_ref[...], emb_ln_b_ref[...])

    scale = 1.0 / (HEAD_DIM ** 0.5)

    # ---- encoder layers (static Python loop over stacked layer weights)
    for l in range(LAYERS):
        wqkv = wqkv_ref[l]                                 # [H, 3H]
        wo = wo_ref[l]                                     # [H, H]

        qkv = _mm(x, wqkv) + bqkv_ref[l]                   # [SEQ, 3H]
        q = qkv[:, 0:HIDDEN]
        k = qkv[:, HIDDEN:2 * HIDDEN]
        v = qkv[:, 2 * HIDDEN:3 * HIDDEN]

        # per-head attention; output projection folded into the head loop
        attn_out = bo_ref[l]                               # [1, H], broadcasts below
        for h in range(HEADS):
            sl = slice(h * HEAD_DIM, (h + 1) * HEAD_DIM)
            qh, kh, vh = q[:, sl], k[:, sl], v[:, sl]
            s = _mm(qh, kh.T) * scale                      # [SEQ, SEQ]
            s = s - jnp.max(s, axis=-1, keepdims=True)
            p = jnp.exp(s)
            p = p * pl.reciprocal(jnp.sum(p, axis=-1, keepdims=True), approx=True)
            ctx_h = _mm(p, vh)                             # [SEQ, HEAD_DIM]
            attn_out = attn_out + _mm(ctx_h, wo[sl, :])    # accumulate into [SEQ, H]

        h1 = _layernorm(x + attn_out, ln1_g_ref[l], ln1_b_ref[l])

        inter = _mm(h1, wi_ref[l]) + bi_ref[l]
        # TODO(synk): HF BERT uses exact erf GELU; tanh-approx GELU used here.
        inter = jax.nn.gelu(inter, approximate=True)
        ffn = _mm(inter, wo2_ref[l]) + bo2_ref[l]
        x = _layernorm(h1 + ffn, ln2_g_ref[l], ln2_b_ref[l])

    # ---- mean-pool over the sequence dim: sum(x, -2) / seq_len
    o_ref[...] = jnp.sum(x, axis=0, keepdims=True) * (1.0 / SEQ)


# ---- parameter construction (deterministic, synthetic) -----------------------
def init_params(key):
    ks = iter(jax.random.split(key, 32))

    def w(shape, dtype=MXU_DTYPE):
        return (0.02 * jax.random.normal(next(ks), shape, dtype=jnp.float32)).astype(dtype)

    L = LAYERS
    return {
        # embeddings
        "word_emb": w((VOCAB, HIDDEN)),
        "pos_emb": w((MAX_POS, HIDDEN), jnp.float32),
        "type_emb": w((TYPE_VOCAB, HIDDEN), jnp.float32),
        "emb_ln_g": jnp.ones((1, HIDDEN), jnp.float32),
        "emb_ln_b": jnp.zeros((1, HIDDEN), jnp.float32),
        # per-layer weights stacked along a leading layer axis
        "wqkv": w((L, HIDDEN, 3 * HIDDEN)),                # fused q/k/v projection
        "bqkv": jnp.zeros((L, 1, 3 * HIDDEN), jnp.float32),
        "wo": w((L, HIDDEN, HIDDEN)),
        "bo": jnp.zeros((L, 1, HIDDEN), jnp.float32),
        "ln1_g": jnp.ones((L, 1, HIDDEN), jnp.float32),
        "ln1_b": jnp.zeros((L, 1, HIDDEN), jnp.float32),
        "wi": w((L, HIDDEN, INTER)),
        "bi": jnp.zeros((L, 1, INTER), jnp.float32),
        "wo2": w((L, INTER, HIDDEN)),
        "bo2": jnp.zeros((L, 1, HIDDEN), jnp.float32),
        "ln2_g": jnp.ones((L, 1, HIDDEN), jnp.float32),
        "ln2_b": jnp.zeros((L, 1, HIDDEN), jnp.float32),
    }


# ---- full forward: ONE pallas_call ------------------------------------------
@functools.partial(jax.jit)
def bert_forward(params, input_ids):
    """input_ids: int32 [seq]  ->  pooled float32 [1, hidden]."""
    args = (input_ids,
            params["word_emb"], params["pos_emb"], params["type_emb"],
            params["emb_ln_g"], params["emb_ln_b"],
            params["wqkv"], params["bqkv"], params["wo"], params["bo"],
            params["ln1_g"], params["ln1_b"],
            params["wi"], params["bi"], params["wo2"], params["bo2"],
            params["ln2_g"], params["ln2_b"])
    return pl.pallas_call(
        bert_kernel,
        out_shape=jax.ShapeDtypeStruct((1, HIDDEN), jnp.float32),
        in_specs=[_SMEM] + [_VMEM] * (len(args) - 1),
        out_specs=_VMEM,
    )(*args)


if __name__ == "__main__":
    key = jax.random.PRNGKey(0)
    k_param, k_ids = jax.random.split(key)

    params = init_params(k_param)
    # TODO(synk): BertTokenizer string tokenization has no Pallas equivalent;
    # deterministic integer token ids stand in for it.
    input_ids = jax.random.randint(k_ids, (SEQ,), 0, VOCAB, dtype=jnp.int32)

    pooled = bert_forward(params, input_ids)
    jax.block_until_ready(pooled)

    assert pooled.shape == (1, HIDDEN), pooled.shape
    assert bool(jnp.all(jnp.isfinite(pooled)))
    print("KERNEL_OK")
</pallas_src>

<mosaic_0001>
module attributes {stable_mosaic.version = 11 : i64} {
  func.func @bert_kernel(%arg0: memref<8xi32, #tpu.memory_space<smem>>, %arg1: memref<100x32xbf16, #tpu.memory_space<vmem>>, %arg2: memref<64x32xf32, #tpu.memory_space<vmem>>, %arg3: memref<2x32xf32, #tpu.memory_space<vmem>>, %arg4: memref<1x32xf32, #tpu.memory_space<vmem>>, %arg5: memref<1x32xf32, #tpu.memory_space<vmem>>, %arg6: memref<2x32x96xbf16, #tpu.memory_space<vmem>>, %arg7: memref<2x1x96xf32, #tpu.memory_space<vmem>>, %arg8: memref<2x32x32xbf16, #tpu.memory_space<vmem>>, %arg9: memref<2x1x32xf32, #tpu.memory_space<vmem>>, %arg10: memref<2x1x32xf32, #tpu.memory_space<vmem>>, %arg11: memref<2x1x32xf32, #tpu.memory_space<vmem>>, %arg12: memref<2x32x64xbf16, #tpu.memory_space<vmem>>, %arg13: memref<2x1x64xf32, #tpu.memory_space<vmem>>, %arg14: memref<2x64x32xbf16, #tpu.memory_space<vmem>>, %arg15: memref<2x1x32xf32, #tpu.memory_space<vmem>>, %arg16: memref<2x1x32xf32, #tpu.memory_space<vmem>>, %arg17: memref<2x1x32xf32, #tpu.memory_space<vmem>>, %arg18: memref<1x32xf32, #tpu.memory_space<vmem>>) attributes {dimension_semantics = [], scalar_prefetch = 0 : i64, scratch_operands = 0 : i64, tpu.core_type = #tpu.core_type<tc>} {
    %0 = tpu.iota {dimensions = array<i32: 0>} : vector<8x100xi32>
    %1 = tpu.iota {dimensions = array<i32: 1>} : vector<8x100xi32>
    %c0_i32 = arith.constant 0 : i32
    %2 = vector.broadcast %c0_i32 : i32 to vector<8x100xi32>
    %c0_i32_0 = arith.constant 0 : i32
    %3 = vector.broadcast %c0_i32_0 : i32 to vector<8x100xi32>
    %4 = arith.cmpi eq, %0, %3 : vector<8x100xi32>
    %c0 = arith.constant 0 : index
    %5 = memref.load %arg0[%c0] : memref<8xi32, #tpu.memory_space<smem>>
    %6 = vector.broadcast %5 : i32 to vector<8x100xi32>
    %7 = arith.select %4, %6, %2 : vector<8x100xi1>, vector<8x100xi32>
    %c1_i32 = arith.constant 1 : i32
    %8 = vector.broadcast %c1_i32 : i32 to vector<8x100xi32>
    %9 = arith.cmpi eq, %0, %8 : vector<8x100xi32>
    %c1 = arith.constant 1 : index
    %10 = memref.load %arg0[%c1] : memref<8xi32, #tpu.memory_space<smem>>
    %11 = vector.broadcast %10 : i32 to vector<8x100xi32>
    %12 = arith.select %9, %11, %7 : vector<8x100xi1>, vector<8x100xi32>
    %c2_i32 = arith.constant 2 : i32
    %13 = vector.broadcast %c2_i32 : i32 to vector<8x100xi32>
    %14 = arith.cmpi eq, %0, %13 : vector<8x100xi32>
    %c2 = arith.constant 2 : index
    %15 = memref.load %arg0[%c2] : memref<8xi32, #tpu.memory_space<smem>>
    %16 = vector.broadcast %15 : i32 to vector<8x100xi32>
    %17 = arith.select %14, %16, %12 : vector<8x100xi1>, vector<8x100xi32>
    %c3_i32 = arith.constant 3 : i32
    %18 = vector.broadcast %c3_i32 : i32 to vector<8x100xi32>
    %19 = arith.cmpi eq, %0, %18 : vector<8x100xi32>
    %c3 = arith.constant 3 : index
    %20 = memref.load %arg0[%c3] : memref<8xi32, #tpu.memory_space<smem>>
    %21 = vector.broadcast %20 : i32 to vector<8x100xi32>
    %22 = arith.select %19, %21, %17 : vector<8x100xi1>, vector<8x100xi32>
    %c4_i32 = arith.constant 4 : i32
    %23 = vector.broadcast %c4_i32 : i32 to vector<8x100xi32>
    %24 = arith.cmpi eq, %0, %23 : vector<8x100xi32>
    %c4 = arith.constant 4 : index
    %25 = memref.load %arg0[%c4] : memref<8xi32, #tpu.memory_space<smem>>
    %26 = vector.broadcast %25 : i32 to vector<8x100xi32>
    %27 = arith.select %24, %26, %22 : vector<8x100xi1>, vector<8x100xi32>
    %c5_i32 = arith.constant 5 : i32
    %28 = vector.broadcast %c5_i32 : i32 to vector<8x100xi32>
    %29 = arith.cmpi eq, %0, %28 : vector<8x100xi32>
    %c5 = arith.constant 5 : index
    %30 = memref.load %arg0[%c5] : memref<8xi32, #tpu.memory_space<smem>>
    %31 = vector.broadcast %30 : i32 to vector<8x100xi32>
    %32 = arith.select %29, %31, %27 : vector<8x100xi1>, vector<8x100xi32>
    %c6_i32 = arith.constant 6 : i32
    %33 = vector.broadcast %c6_i32 : i32 to vector<8x100xi32>
    %34 = arith.cmpi eq, %0, %33 : vector<8x100xi32>
    %c6 = arith.constant 6 : index
    %35 = memref.load %arg0[%c6] : memref<8xi32, #tpu.memory_space<smem>>
    %36 = vector.broadcast %35 : i32 to vector<8x100xi32>
    %37 = arith.select %34, %36, %32 : vector<8x100xi1>, vector<8x100xi32>
    %c7_i32 = arith.constant 7 : i32
    %38 = vector.broadcast %c7_i32 : i32 to vector<8x100xi32>
    %39 = arith.cmpi eq, %0, %38 : vector<8x100xi32>
    %c7 = arith.constant 7 : index
    %40 = memref.load %arg0[%c7] : memref<8xi32, #tpu.memory_space<smem>>
    %41 = vector.broadcast %40 : i32 to vector<8x100xi32>
    %42 = arith.select %39, %41, %37 : vector<8x100xi1>, vector<8x100xi32>
    %43 = arith.cmpi eq, %1, %42 : vector<8x100xi32>
    %44 = arith.extui %43 : vector<8x100xi1> to vector<8x100xi32>
    %45 = arith.sitofp %44 : vector<8x100xi32> to vector<8x100xf32>
    %c0_1 = arith.constant 0 : index
    %c0_2 = arith.constant 0 : index
    %46 = vector.load %arg1[%c0_1, %c0_2] : memref<100x32xbf16, #tpu.memory_space<vmem>>, vector<100x32xbf16>
    %47 = arith.truncf %45 : vector<8x100xf32> to vector<8x100xbf16>
    %cst = arith.constant dense<0.000000e+00> : vector<8x32xf32>
    %48 = tpu.matmul %47, %46, %cst {dimension_numbers = #tpu.dot_dimension_numbers<[1], [0], [0], [1], [0, 0, 1, 1], [], []>} : vector<8x100xbf16>, vector<100x32xbf16>, vector<8x32xf32> -> vector<8x32xf32>
    %c0_3 = arith.constant 0 : index
    %c0_4 = arith.constant 0 : index
    %49 = vector.load %arg2[%c0_3, %c0_4] : memref<64x32xf32, #tpu.memory_space<vmem>>, vector<8x32xf32>
    %50 = arith.addf %48, %49 : vector<8x32xf32>
    %c0_5 = arith.constant 0 : index
    %c0_6 = arith.constant 0 : index
    %51 = vector.load %arg3[%c0_5, %c0_6] : memref<2x32xf32, #tpu.memory_space<vmem>>, vector<1x32xf32>
    %52 = vector.broadcast %51 : vector<1x32xf32> to vector<8x32xf32>
    %53 = arith.addf %50, %52 : vector<8x32xf32>
    %c0_7 = arith.constant 0 : index
    %c0_8 = arith.constant 0 : index
    %54 = vector.load %arg4[%c0_7, %c0_8] : memref<1x32xf32, #tpu.memory_space<vmem>>, vector<1x32xf32>
    %c0_9 = arith.constant 0 : index
    %c0_10 = arith.constant 0 : index
    %55 = vector.load %arg5[%c0_9, %c0_10] : memref<1x32xf32, #tpu.memory_space<vmem>>, vector<1x32xf32>
    %cst_11 = arith.constant dense<0.000000e+00> : vector<8xf32>
    %56 = vector.multi_reduction <add>, %53, %cst_11 [1] : vector<8x32xf32> to vector<8xf32>
    %57 = vector.shape_cast %56 : vector<8xf32> to vector<8x1xf32>
    %cst_12 = arith.constant 3.200000e+01 : f32
    %58 = vector.broadcast %cst_12 : f32 to vector<8x1xf32>
    %59 = arith.divf %57, %58 : vector<8x1xf32>
    %60 = vector.broadcast %59 : vector<8x1xf32> to vector<8x32xf32>
    %61 = arith.subf %53, %60 : vector<8x32xf32>
    %62 = arith.mulf %61, %61 : vector<8x32xf32>
    %cst_13 = arith.constant dense<0.000000e+00> : vector<8xf32>
    %63 = vector.multi_reduction <add>, %62, %cst_13 [1] : vector<8x32xf32> to vector<8xf32>
    %64 = vector.shape_cast %63 : vector<8xf32> to vector<8x1xf32>
    %cst_14 = arith.constant 3.200000e+01 : f32
    %65 = vector.broadcast %cst_14 : f32 to vector<8x1xf32>
    %66 = arith.divf %64, %65 : vector<8x1xf32>
    %67 = vector.broadcast %59 : vector<8x1xf32> to vector<8x32xf32>
    %68 = arith.subf %53, %67 : vector<8x32xf32>
    %cst_15 = arith.constant 9.99999996E-13 : f32
    %69 = vector.broadcast %cst_15 : f32 to vector<8x1xf32>
    %70 = arith.addf %66, %69 : vector<8x1xf32>
    %71 = math.rsqrt %70 : vector<8x1xf32>
    %72 = vector.broadcast %71 : vector<8x1xf32> to vector<8x32xf32>
    %73 = arith.mulf %68, %72 : vector<8x32xf32>
    %74 = vector.broadcast %54 : vector<1x32xf32> to vector<8x32xf32>
    %75 = arith.mulf %73, %74 : vector<8x32xf32>
    %76 = vector.broadcast %55 : vector<1x32xf32> to vector<8x32xf32>
    %77 = arith.addf %75, %76 : vector<8x32xf32>
    %c0_16 = arith.constant 0 : index
    %c0_17 = arith.constant 0 : index
    %c0_18 = arith.constant 0 : index
    %78 = vector.load %arg6[%c0_16, %c0_17, %c0_18] : memref<2x32x96xbf16, #tpu.memory_space<vmem>>, vector<1x32x96xbf16>
    %79 = vector.shape_cast %78 : vector<1x32x96xbf16> to vector<32x96xbf16>
    %c0_19 = arith.constant 0 : index
    %c0_20 = arith.constant 0 : index
    %c0_21 = arith.constant 0 : index
    %80 = vector.load %arg8[%c0_19, %c0_20, %c0_21] : memref<2x32x32xbf16, #tpu.memory_space<vmem>>, vector<1x32x32xbf16>
    %81 = vector.shape_cast %80 : vector<1x32x32xbf16> to vector<32x32xbf16>
    %82 = arith.truncf %77 : vector<8x32xf32> to vector<8x32xbf16>
    %cst_22 = arith.constant dense<0.000000e+00> : vector<8x96xf32>
    %83 = tpu.matmul %82, %79, %cst_22 {dimension_numbers = #tpu.dot_dimension_numbers<[1], [0], [0], [1], [0, 0, 1, 1], [], []>} : vector<8x32xbf16>, vector<32x96xbf16>, vector<8x96xf32> -> vector<8x96xf32>
    %c0_23 = arith.constant 0 : index
    %c0_24 = arith.constant 0 : index
    %c0_25 = arith.constant 0 : index
    %84 = vector.load %arg7[%c0_23, %c0_24, %c0_25] : memref<2x1x96xf32, #tpu.memory_space<vmem>>, vector<1x1x96xf32>
    %85 = vector.shape_cast %84 : vector<1x1x96xf32> to vector<1x96xf32>
    %86 = vector.broadcast %85 : vector<1x96xf32> to vector<8x96xf32>
    %87 = arith.addf %83, %86 : vector<8x96xf32>
    %88 = vector.extract_strided_slice %87 {offsets = [0, 0], sizes = [8, 32], strides = [1, 1]} : vector<8x96xf32> to vector<8x32xf32>
    %89 = vector.extract_strided_slice %87 {offsets = [0, 32], sizes = [8, 32], strides = [1, 1]} : vector<8x96xf32> to vector<8x32xf32>
    %90 = vector.extract_strided_slice %87 {offsets = [0, 64], sizes = [8, 32], strides = [1, 1]} : vector<8x96xf32> to vector<8x32xf32>
    %c0_26 = arith.constant 0 : index
    %c0_27 = arith.constant 0 : index
    %c0_28 = arith.constant 0 : index
    %91 = vector.load %arg9[%c0_26, %c0_27, %c0_28] : memref<2x1x32xf32, #tpu.memory_space<vmem>>, vector<1x1x32xf32>
    %92 = vector.shape_cast %91 : vector<1x1x32xf32> to vector<1x32xf32>
    %93 = vector.extract_strided_slice %88 {offsets = [0, 0], sizes = [8, 8], strides = [1, 1]} : vector<8x32xf32> to vector<8x8xf32>
    %94 = vector.extract_strided_slice %89 {offsets = [0, 0], sizes = [8, 8], strides = [1, 1]} : vector<8x32xf32> to vector<8x8xf32>
    %95 = vector.extract_strided_slice %90 {offsets = [0, 0], sizes = [8, 8], strides = [1, 1]} : vector<8x32xf32> to vector<8x8xf32>
    %96 = tpu.transpose %94, [1, 0] : vector<8x8xf32> -> vector<8x8xf32>
    %97 = arith.truncf %93 : vector<8x8xf32> to vector<8x8xbf16>
    %98 = arith.truncf %96 : vector<8x8xf32> to vector<8x8xbf16>
    %cst_29 = arith.constant dense<0.000000e+00> : vector<8x8xf32>
    %99 = tpu.matmul %97, %98, %cst_29 {dimension_numbers = #tpu.dot_dimension_numbers<[1], [0], [0], [1], [0, 0, 1, 1], [], []>} : vector<8x8xbf16>, vector<8x8xbf16>, vector<8x8xf32> -> vector<8x8xf32>
    %cst_30 = arith.constant 0.353553385 : f32
    %100 = vector.broadcast %cst_30 : f32 to vector<8x8xf32>
    %101 = arith.mulf %99, %100 : vector<8x8xf32>
    %cst_31 = arith.constant dense<0xFF800000> : vector<8xf32>
    %102 = vector.multi_reduction <maximumf>, %101, %cst_31 [1] : vector<8x8xf32> to vector<8xf32>
    %103 = vector.shape_cast %102 : vector<8xf32> to vector<8x1xf32>
    %104 = vector.broadcast %103 : vector<8x1xf32> to vector<8x8xf32>
    %105 = arith.subf %101, %104 : vector<8x8xf32>
    %106 = math.exp %105 : vector<8x8xf32>
    %cst_32 = arith.constant dense<0.000000e+00> : vector<8xf32>
    %107 = vector.multi_reduction <add>, %106, %cst_32 [1] : vector<8x8xf32> to vector<8xf32>
    %108 = vector.shape_cast %107 : vector<8xf32> to vector<8x1xf32>
    %109 = tpu.reciprocal %108 {approx = true} : vector<8x1xf32> -> vector<8x1xf32>
    %110 = vector.broadcast %109 : vector<8x1xf32> to vector<8x8xf32>
    %111 = arith.mulf %106, %110 : vector<8x8xf32>
    %112 = arith.truncf %111 : vector<8x8xf32> to vector<8x8xbf16>
    %113 = arith.truncf %95 : vector<8x8xf32> to vector<8x8xbf16>
    %cst_33 = arith.constant dense<0.000000e+00> : vector<8x8xf32>
    %114 = tpu.matmul %112, %113, %cst_33 {dimension_numbers = #tpu.dot_dimension_numbers<[1], [0], [0], [1], [0, 0, 1, 1], [], []>} : vector<8x8xbf16>, vector<8x8xbf16>, vector<8x8xf32> -> vector<8x8xf32>
    %115 = vector.extract_strided_slice %81 {offsets = [0, 0], sizes = [8, 32], strides = [1, 1]} : vector<32x32xbf16> to vector<8x32xbf16>
    %116 = arith.truncf %114 : vector<8x8xf32> to vector<8x8xbf16>
    %cst_34 = arith.constant dense<0.000000e+00> : vector<8x32xf32>
    %117 = tpu.matmul %116, %115, %cst_34 {dimension_numbers = #tpu.dot_dimension_numbers<[1], [0], [0], [1], [0, 0, 1, 1], [], []>} : vector<8x8xbf16>, vector<8x32xbf16>, vector<8x32xf32> -> vector<8x32xf32>
    %118 = vector.broadcast %92 : vector<1x32xf32> to vector<8x32xf32>
    %119 = arith.addf %118, %117 : vector<8x32xf32>
    %120 = vector.extract_strided_slice %88 {offsets = [0, 8], sizes = [8, 8], strides = [1, 1]} : vector<8x32xf32> to vector<8x8xf32>
    %121 = vector.extract_strided_slice %89 {offsets = [0, 8], sizes = [8, 8], strides = [1, 1]} : vector<8x32xf32> to vector<8x8xf32>
    %122 = vector.extract_strided_slice %90 {offsets = [0, 8], sizes = [8, 8], strides = [1, 1]} : vector<8x32xf32> to vector<8x8xf32>
    %123 = tpu.transpose %121, [1, 0] : vector<8x8xf32> -> vector<8x8xf32>
    %124 = arith.truncf %120 : vector<8x8xf32> to vector<8x8xbf16>
    %125 = arith.truncf %123 : vector<8x8xf32> to vector<8x8xbf16>
    %cst_35 = arith.constant dense<0.000000e+00> : vector<8x8xf32>
    %126 = tpu.matmul %124, %125, %cst_35 {dimension_numbers = #tpu.dot_dimension_numbers<[1], [0], [0], [1], [0, 0, 1, 1], [], []>} : vector<8x8xbf16>, vector<8x8xbf16>, vector<8x8xf32> -> vector<8x8xf32>
    %cst_36 = arith.constant 0.353553385 : f32
    %127 = vector.broadcast %cst_36 : f32 to vector<8x8xf32>
    %128 = arith.mulf %126, %127 : vector<8x8xf32>
    %cst_37 = arith.constant dense<0xFF800000> : vector<8xf32>
    %129 = vector.multi_reduction <maximumf>, %128, %cst_37 [1] : vector<8x8xf32> to vector<8xf32>
    %130 = vector.shape_cast %129 : vector<8xf32> to vector<8x1xf32>
    %131 = vector.broadcast %130 : vector<8x1xf32> to vector<8x8xf32>
    %132 = arith.subf %128, %131 : vector<8x8xf32>
    %133 = math.exp %132 : vector<8x8xf32>
    %cst_38 = arith.constant dense<0.000000e+00> : vector<8xf32>
    %134 = vector.multi_reduction <add>, %133, %cst_38 [1] : vector<8x8xf32> to vector<8xf32>
    %135 = vector.shape_cast %134 : vector<8xf32> to vector<8x1xf32>
    %136 = tpu.reciprocal %135 {approx = true} : vector<8x1xf32> -> vector<8x1xf32>
    %137 = vector.broadcast %136 : vector<8x1xf32> to vector<8x8xf32>
    %138 = arith.mulf %133, %137 : vector<8x8xf32>
    %139 = arith.truncf %138 : vector<8x8xf32> to vector<8x8xbf16>
    %140 = arith.truncf %122 : vector<8x8xf32> to vector<8x8xbf16>
    %cst_39 = arith.constant dense<0.000000e+00> : vector<8x8xf32>
    %141 = tpu.matmul %139, %140, %cst_39 {dimension_numbers = #tpu.dot_dimension_numbers<[1], [0], [0], [1], [0, 0, 1, 1], [], []>} : vector<8x8xbf16>, vector<8x8xbf16>, vector<8x8xf32> -> vector<8x8xf32>
    %142 = vector.extract_strided_slice %81 {offsets = [8, 0], sizes = [8, 32], strides = [1, 1]} : vector<32x32xbf16> to vector<8x32xbf16>
    %143 = arith.truncf %141 : vector<8x8xf32> to vector<8x8xbf16>
    %cst_40 = arith.constant dense<0.000000e+00> : vector<8x32xf32>
    %144 = tpu.matmul %143, %142, %cst_40 {dimension_numbers = #tpu.dot_dimension_numbers<[1], [0], [0], [1], [0, 0, 1, 1], [], []>} : vector<8x8xbf16>, vector<8x32xbf16>, vector<8x32xf32> -> vector<8x32xf32>
    %145 = arith.addf %119, %144 : vector<8x32xf32>
    %146 = vector.extract_strided_slice %88 {offsets = [0, 16], sizes = [8, 8], strides = [1, 1]} : vector<8x32xf32> to vector<8x8xf32>
    %147 = vector.extract_strided_slice %89 {offsets = [0, 16], sizes = [8, 8], strides = [1, 1]} : vector<8x32xf32> to vector<8x8xf32>
    %148 = vector.extract_strided_slice %90 {offsets = [0, 16], sizes = [8, 8], strides = [1, 1]} : vector<8x32xf32> to vector<8x8xf32>
    %149 = tpu.transpose %147, [1, 0] : vector<8x8xf32> -> vector<8x8xf32>
    %150 = arith.truncf %146 : vector<8x8xf32> to vector<8x8xbf16>
    %151 = arith.truncf %149 : vector<8x8xf32> to vector<8x8xbf16>
    %cst_41 = arith.constant dense<0.000000e+00> : vector<8x8xf32>
    %152 = tpu.matmul %150, %151, %cst_41 {dimension_numbers = #tpu.dot_dimension_numbers<[1], [0], [0], [1], [0, 0, 1, 1], [], []>} : vector<8x8xbf16>, vector<8x8xbf16>, vector<8x8xf32> -> vector<8x8xf32>
    %cst_42 = arith.constant 0.353553385 : f32
    %153 = vector.broadcast %cst_42 : f32 to vector<8x8xf32>
    %154 = arith.mulf %152, %153 : vector<8x8xf32>
    %cst_43 = arith.constant dense<0xFF800000> : vector<8xf32>
    %155 = vector.multi_reduction <maximumf>, %154, %cst_43 [1] : vector<8x8xf32> to vector<8xf32>
    %156 = vector.shape_cast %155 : vector<8xf32> to vector<8x1xf32>
    %157 = vector.broadcast %156 : vector<8x1xf32> to vector<8x8xf32>
    %158 = arith.subf %154, %157 : vector<8x8xf32>
    %159 = math.exp %158 : vector<8x8xf32>
    %cst_44 = arith.constant dense<0.000000e+00> : vector<8xf32>
    %160 = vector.multi_reduction <add>, %159, %cst_44 [1] : vector<8x8xf32> to vector<8xf32>
    %161 = vector.shape_cast %160 : vector<8xf32> to vector<8x1xf32>
    %162 = tpu.reciprocal %161 {approx = true} : vector<8x1xf32> -> vector<8x1xf32>
    %163 = vector.broadcast %162 : vector<8x1xf32> to vector<8x8xf32>
    %164 = arith.mulf %159, %163 : vector<8x8xf32>
    %165 = arith.truncf %164 : vector<8x8xf32> to vector<8x8xbf16>
    %166 = arith.truncf %148 : vector<8x8xf32> to vector<8x8xbf16>
    %cst_45 = arith.constant dense<0.000000e+00> : vector<8x8xf32>
    %167 = tpu.matmul %165, %166, %cst_45 {dimension_numbers = #tpu.dot_dimension_numbers<[1], [0], [0], [1], [0, 0, 1, 1], [], []>} : vector<8x8xbf16>, vector<8x8xbf16>, vector<8x8xf32> -> vector<8x8xf32>
    %168 = vector.extract_strided_slice %81 {offsets = [16, 0], sizes = [8, 32], strides = [1, 1]} : vector<32x32xbf16> to vector<8x32xbf16>
    %169 = arith.truncf %167 : vector<8x8xf32> to vector<8x8xbf16>
    %cst_46 = arith.constant dense<0.000000e+00> : vector<8x32xf32>
    %170 = tpu.matmul %169, %168, %cst_46 {dimension_numbers = #tpu.dot_dimension_numbers<[1], [0], [0], [1], [0, 0, 1, 1], [], []>} : vector<8x8xbf16>, vector<8x32xbf16>, vector<8x32xf32> -> vector<8x32xf32>
    %171 = arith.addf %145, %170 : vector<8x32xf32>
    %172 = vector.extract_strided_slice %88 {offsets = [0, 24], sizes = [8, 8], strides = [1, 1]} : vector<8x32xf32> to vector<8x8xf32>
    %173 = vector.extract_strided_slice %89 {offsets = [0, 24], sizes = [8, 8], strides = [1, 1]} : vector<8x32xf32> to vector<8x8xf32>
    %174 = vector.extract_strided_slice %90 {offsets = [0, 24], sizes = [8, 8], strides = [1, 1]} : vector<8x32xf32> to vector<8x8xf32>
    %175 = tpu.transpose %173, [1, 0] : vector<8x8xf32> -> vector<8x8xf32>
    %176 = arith.truncf %172 : vector<8x8xf32> to vector<8x8xbf16>
    %177 = arith.truncf %175 : vector<8x8xf32> to vector<8x8xbf16>
    %cst_47 = arith.constant dense<0.000000e+00> : vector<8x8xf32>
    %178 = tpu.matmul %176, %177, %cst_47 {dimension_numbers = #tpu.dot_dimension_numbers<[1], [0], [0], [1], [0, 0, 1, 1], [], []>} : vector<8x8xbf16>, vector<8x8xbf16>, vector<8x8xf32> -> vector<8x8xf32>
    %cst_48 = arith.constant 0.353553385 : f32
    %179 = vector.broadcast %cst_48 : f32 to vector<8x8xf32>
    %180 = arith.mulf %178, %179 : vector<8x8xf32>
    %cst_49 = arith.constant dense<0xFF800000> : vector<8xf32>
    %181 = vector.multi_reduction <maximumf>, %180, %cst_49 [1] : vector<8x8xf32> to vector<8xf32>
    %182 = vector.shape_cast %181 : vector<8xf32> to vector<8x1xf32>
    %183 = vector.broadcast %182 : vector<8x1xf32> to vector<8x8xf32>
    %184 = arith.subf %180, %183 : vector<8x8xf32>
    %185 = math.exp %184 : vector<8x8xf32>
    %cst_50 = arith.constant dense<0.000000e+00> : vector<8xf32>
    %186 = vector.multi_reduction <add>, %185, %cst_50 [1] : vector<8x8xf32> to vector<8xf32>
    %187 = vector.shape_cast %186 : vector<8xf32> to vector<8x1xf32>
    %188 = tpu.reciprocal %187 {approx = true} : vector<8x1xf32> -> vector<8x1xf32>
    %189 = vector.broadcast %188 : vector<8x1xf32> to vector<8x8xf32>
    %190 = arith.mulf %185, %189 : vector<8x8xf32>
    %191 = arith.truncf %190 : vector<8x8xf32> to vector<8x8xbf16>
    %192 = arith.truncf %174 : vector<8x8xf32> to vector<8x8xbf16>
    %cst_51 = arith.constant dense<0.000000e+00> : vector<8x8xf32>
    %193 = tpu.matmul %191, %192, %cst_51 {dimension_numbers = #tpu.dot_dimension_numbers<[1], [0], [0], [1], [0, 0, 1, 1], [], []>} : vector<8x8xbf16>, vector<8x8xbf16>, vector<8x8xf32> -> vector<8x8xf32>
    %194 = vector.extract_strided_slice %81 {offsets = [24, 0], sizes = [8, 32], strides = [1, 1]} : vector<32x32xbf16> to vector<8x32xbf16>
    %195 = arith.truncf %193 : vector<8x8xf32> to vector<8x8xbf16>
    %cst_52 = arith.constant dense<0.000000e+00> : vector<8x32xf32>
    %196 = tpu.matmul %195, %194, %cst_52 {dimension_numbers = #tpu.dot_dimension_numbers<[1], [0], [0], [1], [0, 0, 1, 1], [], []>} : vector<8x8xbf16>, vector<8x32xbf16>, vector<8x32xf32> -> vector<8x32xf32>
    %197 = arith.addf %171, %196 : vector<8x32xf32>
    %198 = arith.addf %77, %197 : vector<8x32xf32>
    %c0_53 = arith.constant 0 : index
    %c0_54 = arith.constant 0 : index
    %c0_55 = arith.constant 0 : index
    %199 = vector.load %arg10[%c0_53, %c0_54, %c0_55] : memref<2x1x32xf32, #tpu.memory_space<vmem>>, vector<1x1x32xf32>
    %200 = vector.shape_cast %199 : vector<1x1x32xf32> to vector<1x32xf32>
    %c0_56 = arith.constant 0 : index
    %c0_57 = arith.constant 0 : index
    %c0_58 = arith.constant 0 : index
    %201 = vector.load %arg11[%c0_56, %c0_57, %c0_58] : memref<2x1x32xf32, #tpu.memory_space<vmem>>, vector<1x1x32xf32>
    %202 = vector.shape_cast %201 : vector<1x1x32xf32> to vector<1x32xf32>
    %cst_59 = arith.constant dense<0.000000e+00> : vector<8xf32>
    %203 = vector.multi_reduction <add>, %198, %cst_59 [1] : vector<8x32xf32> to vector<8xf32>
    %204 = vector.shape_cast %203 : vector<8xf32> to vector<8x1xf32>
    %cst_60 = arith.constant 3.200000e+01 : f32
    %205 = vector.broadcast %cst_60 : f32 to vector<8x1xf32>
    %206 = arith.divf %204, %205 : vector<8x1xf32>
    %207 = vector.broadcast %206 : vector<8x1xf32> to vector<8x32xf32>
    %208 = arith.subf %198, %207 : vector<8x32xf32>
    %209 = arith.mulf %208, %208 : vector<8x32xf32>
    %cst_61 = arith.constant dense<0.000000e+00> : vector<8xf32>
    %210 = vector.multi_reduction <add>, %209, %cst_61 [1] : vector<8x32xf32> to vector<8xf32>
    %211 = vector.shape_cast %210 : vector<8xf32> to vector<8x1xf32>
    %cst_62 = arith.constant 3.200000e+01 : f32
    %212 = vector.broadcast %cst_62 : f32 to vector<8x1xf32>
    %213 = arith.divf %211, %212 : vector<8x1xf32>
    %214 = vector.broadcast %206 : vector<8x1xf32> to vector<8x32xf32>
    %215 = arith.subf %198, %214 : vector<8x32xf32>
    %cst_63 = arith.constant 9.99999996E-13 : f32
    %216 = vector.broadcast %cst_63 : f32 to vector<8x1xf32>
    %217 = arith.addf %213, %216 : vector<8x1xf32>
    %218 = math.rsqrt %217 : vector<8x1xf32>
    %219 = vector.broadcast %218 : vector<8x1xf32> to vector<8x32xf32>
    %220 = arith.mulf %215, %219 : vector<8x32xf32>
    %221 = vector.broadcast %200 : vector<1x32xf32> to vector<8x32xf32>
    %222 = arith.mulf %220, %221 : vector<8x32xf32>
    %223 = vector.broadcast %202 : vector<1x32xf32> to vector<8x32xf32>
    %224 = arith.addf %222, %223 : vector<8x32xf32>
    %c0_64 = arith.constant 0 : index
    %c0_65 = arith.constant 0 : index
    %c0_66 = arith.constant 0 : index
    %225 = vector.load %arg12[%c0_64, %c0_65, %c0_66] : memref<2x32x64xbf16, #tpu.memory_space<vmem>>, vector<1x32x64xbf16>
    %226 = vector.shape_cast %225 : vector<1x32x64xbf16> to vector<32x64xbf16>
    %227 = arith.truncf %224 : vector<8x32xf32> to vector<8x32xbf16>
    %cst_67 = arith.constant dense<0.000000e+00> : vector<8x64xf32>
    %228 = tpu.matmul %227, %226, %cst_67 {dimension_numbers = #tpu.dot_dimension_numbers<[1], [0], [0], [1], [0, 0, 1, 1], [], []>} : vector<8x32xbf16>, vector<32x64xbf16>, vector<8x64xf32> -> vector<8x64xf32>
    %c0_68 = arith.constant 0 : index
    %c0_69 = arith.constant 0 : index
    %c0_70 = arith.constant 0 : index
    %229 = vector.load %arg13[%c0_68, %c0_69, %c0_70] : memref<2x1x64xf32, #tpu.memory_space<vmem>>, vector<1x1x64xf32>
    %230 = vector.shape_cast %229 : vector<1x1x64xf32> to vector<1x64xf32>
    %231 = vector.broadcast %230 : vector<1x64xf32> to vector<8x64xf32>
    %232 = arith.addf %228, %231 : vector<8x64xf32>
    %233 = arith.mulf %232, %232 : vector<8x64xf32>
    %234 = arith.mulf %232, %233 : vector<8x64xf32>
    %cst_71 = arith.constant 4.471500e-02 : f32
    %235 = vector.broadcast %cst_71 : f32 to vector<8x64xf32>
    %236 = arith.mulf %235, %234 : vector<8x64xf32>
    %237 = arith.addf %232, %236 : vector<8x64xf32>
    %cst_72 = arith.constant 0.797884583 : f32
    %238 = vector.broadcast %cst_72 : f32 to vector<8x64xf32>
    %239 = arith.mulf %238, %237 : vector<8x64xf32>
    %240 = math.tanh %239 : vector<8x64xf32>
    %cst_73 = arith.constant 1.000000e+00 : f32
    %241 = vector.broadcast %cst_73 : f32 to vector<8x64xf32>
    %242 = arith.addf %241, %240 : vector<8x64xf32>
    %cst_74 = arith.constant 5.000000e-01 : f32
    %243 = vector.broadcast %cst_74 : f32 to vector<8x64xf32>
    %244 = arith.mulf %243, %242 : vector<8x64xf32>
    %245 = arith.mulf %232, %244 : vector<8x64xf32>
    %c0_75 = arith.constant 0 : index
    %c0_76 = arith.constant 0 : index
    %c0_77 = arith.constant 0 : index
    %246 = vector.load %arg14[%c0_75, %c0_76, %c0_77] : memref<2x64x32xbf16, #tpu.memory_space<vmem>>, vector<1x64x32xbf16>
    %247 = vector.shape_cast %246 : vector<1x64x32xbf16> to vector<64x32xbf16>
    %248 = arith.truncf %245 : vector<8x64xf32> to vector<8x64xbf16>
    %cst_78 = arith.constant dense<0.000000e+00> : vector<8x32xf32>
    %249 = tpu.matmul %248, %247, %cst_78 {dimension_numbers = #tpu.dot_dimension_numbers<[1], [0], [0], [1], [0, 0, 1, 1], [], []>} : vector<8x64xbf16>, vector<64x32xbf16>, vector<8x32xf32> -> vector<8x32xf32>
    %c0_79 = arith.constant 0 : index
    %c0_80 = arith.constant 0 : index
    %c0_81 = arith.constant 0 : index
    %250 = vector.load %arg15[%c0_79, %c0_80, %c0_81] : memref<2x1x32xf32, #tpu.memory_space<vmem>>, vector<1x1x32xf32>
    %251 = vector.shape_cast %250 : vector<1x1x32xf32> to vector<1x32xf32>
    %252 = vector.broadcast %251 : vector<1x32xf32> to vector<8x32xf32>
    %253 = arith.addf %249, %252 : vector<8x32xf32>
    %254 = arith.addf %224, %253 : vector<8x32xf32>
    %c0_82 = arith.constant 0 : index
    %c0_83 = arith.constant 0 : index
    %c0_84 = arith.constant 0 : index
    %255 = vector.load %arg16[%c0_82, %c0_83, %c0_84] : memref<2x1x32xf32, #tpu.memory_space<vmem>>, vector<1x1x32xf32>
    %256 = vector.shape_cast %255 : vector<1x1x32xf32> to vector<1x32xf32>
    %c0_85 = arith.constant 0 : index
    %c0_86 = arith.constant 0 : index
    %c0_87 = arith.constant 0 : index
    %257 = vector.load %arg17[%c0_85, %c0_86, %c0_87] : memref<2x1x32xf32, #tpu.memory_space<vmem>>, vector<1x1x32xf32>
    %258 = vector.shape_cast %257 : vector<1x1x32xf32> to vector<1x32xf32>
    %cst_88 = arith.constant dense<0.000000e+00> : vector<8xf32>
    %259 = vector.multi_reduction <add>, %254, %cst_88 [1] : vector<8x32xf32> to vector<8xf32>
    %260 = vector.shape_cast %259 : vector<8xf32> to vector<8x1xf32>
    %cst_89 = arith.constant 3.200000e+01 : f32
    %261 = vector.broadcast %cst_89 : f32 to vector<8x1xf32>
    %262 = arith.divf %260, %261 : vector<8x1xf32>
    %263 = vector.broadcast %262 : vector<8x1xf32> to vector<8x32xf32>
    %264 = arith.subf %254, %263 : vector<8x32xf32>
    %265 = arith.mulf %264, %264 : vector<8x32xf32>
    %cst_90 = arith.constant dense<0.000000e+00> : vector<8xf32>
    %266 = vector.multi_reduction <add>, %265, %cst_90 [1] : vector<8x32xf32> to vector<8xf32>
    %267 = vector.shape_cast %266 : vector<8xf32> to vector<8x1xf32>
    %cst_91 = arith.constant 3.200000e+01 : f32
    %268 = vector.broadcast %cst_91 : f32 to vector<8x1xf32>
    %269 = arith.divf %267, %268 : vector<8x1xf32>
    %270 = vector.broadcast %262 : vector<8x1xf32> to vector<8x32xf32>
    %271 = arith.subf %254, %270 : vector<8x32xf32>
    %cst_92 = arith.constant 9.99999996E-13 : f32
    %272 = vector.broadcast %cst_92 : f32 to vector<8x1xf32>
    %273 = arith.addf %269, %272 : vector<8x1xf32>
    %274 = math.rsqrt %273 : vector<8x1xf32>
    %275 = vector.broadcast %274 : vector<8x1xf32> to vector<8x32xf32>
    %276 = arith.mulf %271, %275 : vector<8x32xf32>
    %277 = vector.broadcast %256 : vector<1x32xf32> to vector<8x32xf32>
    %278 = arith.mulf %276, %277 : vector<8x32xf32>
    %279 = vector.broadcast %258 : vector<1x32xf32> to vector<8x32xf32>
    %280 = arith.addf %278, %279 : vector<8x32xf32>
    %c1_93 = arith.constant 1 : index
    %c0_94 = arith.constant 0 : index
    %c0_95 = arith.constant 0 : index
    %281 = vector.load %arg6[%c1_93, %c0_94, %c0_95] : memref<2x32x96xbf16, #tpu.memory_space<vmem>>, vector<1x32x96xbf16>
    %282 = vector.shape_cast %281 : vector<1x32x96xbf16> to vector<32x96xbf16>
    %c1_96 = arith.constant 1 : index
    %c0_97 = arith.constant 0 : index
    %c0_98 = arith.constant 0 : index
    %283 = vector.load %arg8[%c1_96, %c0_97, %c0_98] : memref<2x32x32xbf16, #tpu.memory_space<vmem>>, vector<1x32x32xbf16>
    %284 = vector.shape_cast %283 : vector<1x32x32xbf16> to vector<32x32xbf16>
    %285 = arith.truncf %280 : vector<8x32xf32> to vector<8x32xbf16>
    %cst_99 = arith.constant dense<0.000000e+00> : vector<8x96xf32>
    %286 = tpu.matmul %285, %282, %cst_99 {dimension_numbers = #tpu.dot_dimension_numbers<[1], [0], [0], [1], [0, 0, 1, 1], [], []>} : vector<8x32xbf16>, vector<32x96xbf16>, vector<8x96xf32> -> vector<8x96xf32>
    %c1_100 = arith.constant 1 : index
    %c0_101 = arith.constant 0 : index
    %c0_102 = arith.constant 0 : index
    %287 = vector.load %arg7[%c1_100, %c0_101, %c0_102] : memref<2x1x96xf32, #tpu.memory_space<vmem>>, vector<1x1x96xf32>
    %288 = vector.shape_cast %287 : vector<1x1x96xf32> to vector<1x96xf32>
    %289 = vector.broadcast %288 : vector<1x96xf32> to vector<8x96xf32>
    %290 = arith.addf %286, %289 : vector<8x96xf32>
    %291 = vector.extract_strided_slice %290 {offsets = [0, 0], sizes = [8, 32], strides = [1, 1]} : vector<8x96xf32> to vector<8x32xf32>
    %292 = vector.extract_strided_slice %290 {offsets = [0, 32], sizes = [8, 32], strides = [1, 1]} : vector<8x96xf32> to vector<8x32xf32>
    %293 = vector.extract_strided_slice %290 {offsets = [0, 64], sizes = [8, 32], strides = [1, 1]} : vector<8x96xf32> to vector<8x32xf32>
    %c1_103 = arith.constant 1 : index
    %c0_104 = arith.constant 0 : index
    %c0_105 = arith.constant 0 : index
    %294 = vector.load %arg9[%c1_103, %c0_104, %c0_105] : memref<2x1x32xf32, #tpu.memory_space<vmem>>, vector<1x1x32xf32>
    %295 = vector.shape_cast %294 : vector<1x1x32xf32> to vector<1x32xf32>
    %296 = vector.extract_strided_slice %291 {offsets = [0, 0], sizes = [8, 8], strides = [1, 1]} : vector<8x32xf32> to vector<8x8xf32>
    %297 = vector.extract_strided_slice %292 {offsets = [0, 0], sizes = [8, 8], strides = [1, 1]} : vector<8x32xf32> to vector<8x8xf32>
    %298 = vector.extract_strided_slice %293 {offsets = [0, 0], sizes = [8, 8], strides = [1, 1]} : vector<8x32xf32> to vector<8x8xf32>
    %299 = tpu.transpose %297, [1, 0] : vector<8x8xf32> -> vector<8x8xf32>
    %300 = arith.truncf %296 : vector<8x8xf32> to vector<8x8xbf16>
    %301 = arith.truncf %299 : vector<8x8xf32> to vector<8x8xbf16>
    %cst_106 = arith.constant dense<0.000000e+00> : vector<8x8xf32>
    %302 = tpu.matmul %300, %301, %cst_106 {dimension_numbers = #tpu.dot_dimension_numbers<[1], [0], [0], [1], [0, 0, 1, 1], [], []>} : vector<8x8xbf16>, vector<8x8xbf16>, vector<8x8xf32> -> vector<8x8xf32>
    %cst_107 = arith.constant 0.353553385 : f32
    %303 = vector.broadcast %cst_107 : f32 to vector<8x8xf32>
    %304 = arith.mulf %302, %303 : vector<8x8xf32>
    %cst_108 = arith.constant dense<0xFF800000> : vector<8xf32>
    %305 = vector.multi_reduction <maximumf>, %304, %cst_108 [1] : vector<8x8xf32> to vector<8xf32>
    %306 = vector.shape_cast %305 : vector<8xf32> to vector<8x1xf32>
    %307 = vector.broadcast %306 : vector<8x1xf32> to vector<8x8xf32>
    %308 = arith.subf %304, %307 : vector<8x8xf32>
    %309 = math.exp %308 : vector<8x8xf32>
    %cst_109 = arith.constant dense<0.000000e+00> : vector<8xf32>
    %310 = vector.multi_reduction <add>, %309, %cst_109 [1] : vector<8x8xf32> to vector<8xf32>
    %311 = vector.shape_cast %310 : vector<8xf32> to vector<8x1xf32>
    %312 = tpu.reciprocal %311 {approx = true} : vector<8x1xf32> -> vector<8x1xf32>
    %313 = vector.broadcast %312 : vector<8x1xf32> to vector<8x8xf32>
    %314 = arith.mulf %309, %313 : vector<8x8xf32>
    %315 = arith.truncf %314 : vector<8x8xf32> to vector<8x8xbf16>
    %316 = arith.truncf %298 : vector<8x8xf32> to vector<8x8xbf16>
    %cst_110 = arith.constant dense<0.000000e+00> : vector<8x8xf32>
    %317 = tpu.matmul %315, %316, %cst_110 {dimension_numbers = #tpu.dot_dimension_numbers<[1], [0], [0], [1], [0, 0, 1, 1], [], []>} : vector<8x8xbf16>, vector<8x8xbf16>, vector<8x8xf32> -> vector<8x8xf32>
    %318 = vector.extract_strided_slice %284 {offsets = [0, 0], sizes = [8, 32], strides = [1, 1]} : vector<32x32xbf16> to vector<8x32xbf16>
    %319 = arith.truncf %317 : vector<8x8xf32> to vector<8x8xbf16>
    %cst_111 = arith.constant dense<0.000000e+00> : vector<8x32xf32>
    %320 = tpu.matmul %319, %318, %cst_111 {dimension_numbers = #tpu.dot_dimension_numbers<[1], [0], [0], [1], [0, 0, 1, 1], [], []>} : vector<8x8xbf16>, vector<8x32xbf16>, vector<8x32xf32> -> vector<8x32xf32>
    %321 = vector.broadcast %295 : vector<1x32xf32> to vector<8x32xf32>
    %322 = arith.addf %321, %320 : vector<8x32xf32>
    %323 = vector.extract_strided_slice %291 {offsets = [0, 8], sizes = [8, 8], strides = [1, 1]} : vector<8x32xf32> to vector<8x8xf32>
    %324 = vector.extract_strided_slice %292 {offsets = [0, 8], sizes = [8, 8], strides = [1, 1]} : vector<8x32xf32> to vector<8x8xf32>
    %325 = vector.extract_strided_slice %293 {offsets = [0, 8], sizes = [8, 8], strides = [1, 1]} : vector<8x32xf32> to vector<8x8xf32>
    %326 = tpu.transpose %324, [1, 0] : vector<8x8xf32> -> vector<8x8xf32>
    %327 = arith.truncf %323 : vector<8x8xf32> to vector<8x8xbf16>
    %328 = arith.truncf %326 : vector<8x8xf32> to vector<8x8xbf16>
    %cst_112 = arith.constant dense<0.000000e+00> : vector<8x8xf32>
    %329 = tpu.matmul %327, %328, %cst_112 {dimension_numbers = #tpu.dot_dimension_numbers<[1], [0], [0], [1], [0, 0, 1, 1], [], []>} : vector<8x8xbf16>, vector<8x8xbf16>, vector<8x8xf32> -> vector<8x8xf32>
    %cst_113 = arith.constant 0.353553385 : f32
    %330 = vector.broadcast %cst_113 : f32 to vector<8x8xf32>
    %331 = arith.mulf %329, %330 : vector<8x8xf32>
    %cst_114 = arith.constant dense<0xFF800000> : vector<8xf32>
    %332 = vector.multi_reduction <maximumf>, %331, %cst_114 [1] : vector<8x8xf32> to vector<8xf32>
    %333 = vector.shape_cast %332 : vector<8xf32> to vector<8x1xf32>
    %334 = vector.broadcast %333 : vector<8x1xf32> to vector<8x8xf32>
    %335 = arith.subf %331, %334 : vector<8x8xf32>
    %336 = math.exp %335 : vector<8x8xf32>
    %cst_115 = arith.constant dense<0.000000e+00> : vector<8xf32>
    %337 = vector.multi_reduction <add>, %336, %cst_115 [1] : vector<8x8xf32> to vector<8xf32>
    %338 = vector.shape_cast %337 : vector<8xf32> to vector<8x1xf32>
    %339 = tpu.reciprocal %338 {approx = true} : vector<8x1xf32> -> vector<8x1xf32>
    %340 = vector.broadcast %339 : vector<8x1xf32> to vector<8x8xf32>
    %341 = arith.mulf %336, %340 : vector<8x8xf32>
    %342 = arith.truncf %341 : vector<8x8xf32> to vector<8x8xbf16>
    %343 = arith.truncf %325 : vector<8x8xf32> to vector<8x8xbf16>
    %cst_116 = arith.constant dense<0.000000e+00> : vector<8x8xf32>
    %344 = tpu.matmul %342, %343, %cst_116 {dimension_numbers = #tpu.dot_dimension_numbers<[1], [0], [0], [1], [0, 0, 1, 1], [], []>} : vector<8x8xbf16>, vector<8x8xbf16>, vector<8x8xf32> -> vector<8x8xf32>
    %345 = vector.extract_strided_slice %284 {offsets = [8, 0], sizes = [8, 32], strides = [1, 1]} : vector<32x32xbf16> to vector<8x32xbf16>
    %346 = arith.truncf %344 : vector<8x8xf32> to vector<8x8xbf16>
    %cst_117 = arith.constant dense<0.000000e+00> : vector<8x32xf32>
    %347 = tpu.matmul %346, %345, %cst_117 {dimension_numbers = #tpu.dot_dimension_numbers<[1], [0], [0], [1], [0, 0, 1, 1], [], []>} : vector<8x8xbf16>, vector<8x32xbf16>, vector<8x32xf32> -> vector<8x32xf32>
    %348 = arith.addf %322, %347 : vector<8x32xf32>
    %349 = vector.extract_strided_slice %291 {offsets = [0, 16], sizes = [8, 8], strides = [1, 1]} : vector<8x32xf32> to vector<8x8xf32>
    %350 = vector.extract_strided_slice %292 {offsets = [0, 16], sizes = [8, 8], strides = [1, 1]} : vector<8x32xf32> to vector<8x8xf32>
    %351 = vector.extract_strided_slice %293 {offsets = [0, 16], sizes = [8, 8], strides = [1, 1]} : vector<8x32xf32> to vector<8x8xf32>
    %352 = tpu.transpose %350, [1, 0] : vector<8x8xf32> -> vector<8x8xf32>
    %353 = arith.truncf %349 : vector<8x8xf32> to vector<8x8xbf16>
    %354 = arith.truncf %352 : vector<8x8xf32> to vector<8x8xbf16>
    %cst_118 = arith.constant dense<0.000000e+00> : vector<8x8xf32>
    %355 = tpu.matmul %353, %354, %cst_118 {dimension_numbers = #tpu.dot_dimension_numbers<[1], [0], [0], [1], [0, 0, 1, 1], [], []>} : vector<8x8xbf16>, vector<8x8xbf16>, vector<8x8xf32> -> vector<8x8xf32>
    %cst_119 = arith.constant 0.353553385 : f32
    %356 = vector.broadcast %cst_119 : f32 to vector<8x8xf32>
    %357 = arith.mulf %355, %356 : vector<8x8xf32>
    %cst_120 = arith.constant dense<0xFF800000> : vector<8xf32>
    %358 = vector.multi_reduction <maximumf>, %357, %cst_120 [1] : vector<8x8xf32> to vector<8xf32>
    %359 = vector.shape_cast %358 : vector<8xf32> to vector<8x1xf32>
    %360 = vector.broadcast %359 : vector<8x1xf32> to vector<8x8xf32>
    %361 = arith.subf %357, %360 : vector<8x8xf32>
    %362 = math.exp %361 : vector<8x8xf32>
    %cst_121 = arith.constant dense<0.000000e+00> : vector<8xf32>
    %363 = vector.multi_reduction <add>, %362, %cst_121 [1] : vector<8x8xf32> to vector<8xf32>
    %364 = vector.shape_cast %363 : vector<8xf32> to vector<8x1xf32>
    %365 = tpu.reciprocal %364 {approx = true} : vector<8x1xf32> -> vector<8x1xf32>
    %366 = vector.broadcast %365 : vector<8x1xf32> to vector<8x8xf32>
    %367 = arith.mulf %362, %366 : vector<8x8xf32>
    %368 = arith.truncf %367 : vector<8x8xf32> to vector<8x8xbf16>
    %369 = arith.truncf %351 : vector<8x8xf32> to vector<8x8xbf16>
    %cst_122 = arith.constant dense<0.000000e+00> : vector<8x8xf32>
    %370 = tpu.matmul %368, %369, %cst_122 {dimension_numbers = #tpu.dot_dimension_numbers<[1], [0], [0], [1], [0, 0, 1, 1], [], []>} : vector<8x8xbf16>, vector<8x8xbf16>, vector<8x8xf32> -> vector<8x8xf32>
    %371 = vector.extract_strided_slice %284 {offsets = [16, 0], sizes = [8, 32], strides = [1, 1]} : vector<32x32xbf16> to vector<8x32xbf16>
    %372 = arith.truncf %370 : vector<8x8xf32> to vector<8x8xbf16>
    %cst_123 = arith.constant dense<0.000000e+00> : vector<8x32xf32>
    %373 = tpu.matmul %372, %371, %cst_123 {dimension_numbers = #tpu.dot_dimension_numbers<[1], [0], [0], [1], [0, 0, 1, 1], [], []>} : vector<8x8xbf16>, vector<8x32xbf16>, vector<8x32xf32> -> vector<8x32xf32>
    %374 = arith.addf %348, %373 : vector<8x32xf32>
    %375 = vector.extract_strided_slice %291 {offsets = [0, 24], sizes = [8, 8], strides = [1, 1]} : vector<8x32xf32> to vector<8x8xf32>
    %376 = vector.extract_strided_slice %292 {offsets = [0, 24], sizes = [8, 8], strides = [1, 1]} : vector<8x32xf32> to vector<8x8xf32>
    %377 = vector.extract_strided_slice %293 {offsets = [0, 24], sizes = [8, 8], strides = [1, 1]} : vector<8x32xf32> to vector<8x8xf32>
    %378 = tpu.transpose %376, [1, 0] : vector<8x8xf32> -> vector<8x8xf32>
    %379 = arith.truncf %375 : vector<8x8xf32> to vector<8x8xbf16>
    %380 = arith.truncf %378 : vector<8x8xf32> to vector<8x8xbf16>
    %cst_124 = arith.constant dense<0.000000e+00> : vector<8x8xf32>
    %381 = tpu.matmul %379, %380, %cst_124 {dimension_numbers = #tpu.dot_dimension_numbers<[1], [0], [0], [1], [0, 0, 1, 1], [], []>} : vector<8x8xbf16>, vector<8x8xbf16>, vector<8x8xf32> -> vector<8x8xf32>
    %cst_125 = arith.constant 0.353553385 : f32
    %382 = vector.broadcast %cst_125 : f32 to vector<8x8xf32>
    %383 = arith.mulf %381, %382 : vector<8x8xf32>
    %cst_126 = arith.constant dense<0xFF800000> : vector<8xf32>
    %384 = vector.multi_reduction <maximumf>, %383, %cst_126 [1] : vector<8x8xf32> to vector<8xf32>
    %385 = vector.shape_cast %384 : vector<8xf32> to vector<8x1xf32>
    %386 = vector.broadcast %385 : vector<8x1xf32> to vector<8x8xf32>
    %387 = arith.subf %383, %386 : vector<8x8xf32>
    %388 = math.exp %387 : vector<8x8xf32>
    %cst_127 = arith.constant dense<0.000000e+00> : vector<8xf32>
    %389 = vector.multi_reduction <add>, %388, %cst_127 [1] : vector<8x8xf32> to vector<8xf32>
    %390 = vector.shape_cast %389 : vector<8xf32> to vector<8x1xf32>
    %391 = tpu.reciprocal %390 {approx = true} : vector<8x1xf32> -> vector<8x1xf32>
    %392 = vector.broadcast %391 : vector<8x1xf32> to vector<8x8xf32>
    %393 = arith.mulf %388, %392 : vector<8x8xf32>
    %394 = arith.truncf %393 : vector<8x8xf32> to vector<8x8xbf16>
    %395 = arith.truncf %377 : vector<8x8xf32> to vector<8x8xbf16>
    %cst_128 = arith.constant dense<0.000000e+00> : vector<8x8xf32>
    %396 = tpu.matmul %394, %395, %cst_128 {dimension_numbers = #tpu.dot_dimension_numbers<[1], [0], [0], [1], [0, 0, 1, 1], [], []>} : vector<8x8xbf16>, vector<8x8xbf16>, vector<8x8xf32> -> vector<8x8xf32>
    %397 = vector.extract_strided_slice %284 {offsets = [24, 0], sizes = [8, 32], strides = [1, 1]} : vector<32x32xbf16> to vector<8x32xbf16>
    %398 = arith.truncf %396 : vector<8x8xf32> to vector<8x8xbf16>
    %cst_129 = arith.constant dense<0.000000e+00> : vector<8x32xf32>
    %399 = tpu.matmul %398, %397, %cst_129 {dimension_numbers = #tpu.dot_dimension_numbers<[1], [0], [0], [1], [0, 0, 1, 1], [], []>} : vector<8x8xbf16>, vector<8x32xbf16>, vector<8x32xf32> -> vector<8x32xf32>
    %400 = arith.addf %374, %399 : vector<8x32xf32>
    %401 = arith.addf %280, %400 : vector<8x32xf32>
    %c1_130 = arith.constant 1 : index
    %c0_131 = arith.constant 0 : index
    %c0_132 = arith.constant 0 : index
    %402 = vector.load %arg10[%c1_130, %c0_131, %c0_132] : memref<2x1x32xf32, #tpu.memory_space<vmem>>, vector<1x1x32xf32>
    %403 = vector.shape_cast %402 : vector<1x1x32xf32> to vector<1x32xf32>
    %c1_133 = arith.constant 1 : index
    %c0_134 = arith.constant 0 : index
    %c0_135 = arith.constant 0 : index
    %404 = vector.load %arg11[%c1_133, %c0_134, %c0_135] : memref<2x1x32xf32, #tpu.memory_space<vmem>>, vector<1x1x32xf32>
    %405 = vector.shape_cast %404 : vector<1x1x32xf32> to vector<1x32xf32>
    %cst_136 = arith.constant dense<0.000000e+00> : vector<8xf32>
    %406 = vector.multi_reduction <add>, %401, %cst_136 [1] : vector<8x32xf32> to vector<8xf32>
    %407 = vector.shape_cast %406 : vector<8xf32> to vector<8x1xf32>
    %cst_137 = arith.constant 3.200000e+01 : f32
    %408 = vector.broadcast %cst_137 : f32 to vector<8x1xf32>
    %409 = arith.divf %407, %408 : vector<8x1xf32>
    %410 = vector.broadcast %409 : vector<8x1xf32> to vector<8x32xf32>
    %411 = arith.subf %401, %410 : vector<8x32xf32>
    %412 = arith.mulf %411, %411 : vector<8x32xf32>
    %cst_138 = arith.constant dense<0.000000e+00> : vector<8xf32>
    %413 = vector.multi_reduction <add>, %412, %cst_138 [1] : vector<8x32xf32> to vector<8xf32>
    %414 = vector.shape_cast %413 : vector<8xf32> to vector<8x1xf32>
    %cst_139 = arith.constant 3.200000e+01 : f32
    %415 = vector.broadcast %cst_139 : f32 to vector<8x1xf32>
    %416 = arith.divf %414, %415 : vector<8x1xf32>
    %417 = vector.broadcast %409 : vector<8x1xf32> to vector<8x32xf32>
    %418 = arith.subf %401, %417 : vector<8x32xf32>
    %cst_140 = arith.constant 9.99999996E-13 : f32
    %419 = vector.broadcast %cst_140 : f32 to vector<8x1xf32>
    %420 = arith.addf %416, %419 : vector<8x1xf32>
    %421 = math.rsqrt %420 : vector<8x1xf32>
    %422 = vector.broadcast %421 : vector<8x1xf32> to vector<8x32xf32>
    %423 = arith.mulf %418, %422 : vector<8x32xf32>
    %424 = vector.broadcast %403 : vector<1x32xf32> to vector<8x32xf32>
    %425 = arith.mulf %423, %424 : vector<8x32xf32>
    %426 = vector.broadcast %405 : vector<1x32xf32> to vector<8x32xf32>
    %427 = arith.addf %425, %426 : vector<8x32xf32>
    %c1_141 = arith.constant 1 : index
    %c0_142 = arith.constant 0 : index
    %c0_143 = arith.constant 0 : index
    %428 = vector.load %arg12[%c1_141, %c0_142, %c0_143] : memref<2x32x64xbf16, #tpu.memory_space<vmem>>, vector<1x32x64xbf16>
    %429 = vector.shape_cast %428 : vector<1x32x64xbf16> to vector<32x64xbf16>
    %430 = arith.truncf %427 : vector<8x32xf32> to vector<8x32xbf16>
    %cst_144 = arith.constant dense<0.000000e+00> : vector<8x64xf32>
    %431 = tpu.matmul %430, %429, %cst_144 {dimension_numbers = #tpu.dot_dimension_numbers<[1], [0], [0], [1], [0, 0, 1, 1], [], []>} : vector<8x32xbf16>, vector<32x64xbf16>, vector<8x64xf32> -> vector<8x64xf32>
    %c1_145 = arith.constant 1 : index
    %c0_146 = arith.constant 0 : index
    %c0_147 = arith.constant 0 : index
    %432 = vector.load %arg13[%c1_145, %c0_146, %c0_147] : memref<2x1x64xf32, #tpu.memory_space<vmem>>, vector<1x1x64xf32>
    %433 = vector.shape_cast %432 : vector<1x1x64xf32> to vector<1x64xf32>
    %434 = vector.broadcast %433 : vector<1x64xf32> to vector<8x64xf32>
    %435 = arith.addf %431, %434 : vector<8x64xf32>
    %436 = arith.mulf %435, %435 : vector<8x64xf32>
    %437 = arith.mulf %435, %436 : vector<8x64xf32>
    %cst_148 = arith.constant 4.471500e-02 : f32
    %438 = vector.broadcast %cst_148 : f32 to vector<8x64xf32>
    %439 = arith.mulf %438, %437 : vector<8x64xf32>
    %440 = arith.addf %435, %439 : vector<8x64xf32>
    %cst_149 = arith.constant 0.797884583 : f32
    %441 = vector.broadcast %cst_149 : f32 to vector<8x64xf32>
    %442 = arith.mulf %441, %440 : vector<8x64xf32>
    %443 = math.tanh %442 : vector<8x64xf32>
    %cst_150 = arith.constant 1.000000e+00 : f32
    %444 = vector.broadcast %cst_150 : f32 to vector<8x64xf32>
    %445 = arith.addf %444, %443 : vector<8x64xf32>
    %cst_151 = arith.constant 5.000000e-01 : f32
    %446 = vector.broadcast %cst_151 : f32 to vector<8x64xf32>
    %447 = arith.mulf %446, %445 : vector<8x64xf32>
    %448 = arith.mulf %435, %447 : vector<8x64xf32>
    %c1_152 = arith.constant 1 : index
    %c0_153 = arith.constant 0 : index
    %c0_154 = arith.constant 0 : index
    %449 = vector.load %arg14[%c1_152, %c0_153, %c0_154] : memref<2x64x32xbf16, #tpu.memory_space<vmem>>, vector<1x64x32xbf16>
    %450 = vector.shape_cast %449 : vector<1x64x32xbf16> to vector<64x32xbf16>
    %451 = arith.truncf %448 : vector<8x64xf32> to vector<8x64xbf16>
    %cst_155 = arith.constant dense<0.000000e+00> : vector<8x32xf32>
    %452 = tpu.matmul %451, %450, %cst_155 {dimension_numbers = #tpu.dot_dimension_numbers<[1], [0], [0], [1], [0, 0, 1, 1], [], []>} : vector<8x64xbf16>, vector<64x32xbf16>, vector<8x32xf32> -> vector<8x32xf32>
    %c1_156 = arith.constant 1 : index
    %c0_157 = arith.constant 0 : index
    %c0_158 = arith.constant 0 : index
    %453 = vector.load %arg15[%c1_156, %c0_157, %c0_158] : memref<2x1x32xf32, #tpu.memory_space<vmem>>, vector<1x1x32xf32>
    %454 = vector.shape_cast %453 : vector<1x1x32xf32> to vector<1x32xf32>
    %455 = vector.broadcast %454 : vector<1x32xf32> to vector<8x32xf32>
    %456 = arith.addf %452, %455 : vector<8x32xf32>
    %457 = arith.addf %427, %456 : vector<8x32xf32>
    %c1_159 = arith.constant 1 : index
    %c0_160 = arith.constant 0 : index
    %c0_161 = arith.constant 0 : index
    %458 = vector.load %arg16[%c1_159, %c0_160, %c0_161] : memref<2x1x32xf32, #tpu.memory_space<vmem>>, vector<1x1x32xf32>
    %459 = vector.shape_cast %458 : vector<1x1x32xf32> to vector<1x32xf32>
    %c1_162 = arith.constant 1 : index
    %c0_163 = arith.constant 0 : index
    %c0_164 = arith.constant 0 : index
    %460 = vector.load %arg17[%c1_162, %c0_163, %c0_164] : memref<2x1x32xf32, #tpu.memory_space<vmem>>, vector<1x1x32xf32>
    %461 = vector.shape_cast %460 : vector<1x1x32xf32> to vector<1x32xf32>
    %cst_165 = arith.constant dense<0.000000e+00> : vector<8xf32>
    %462 = vector.multi_reduction <add>, %457, %cst_165 [1] : vector<8x32xf32> to vector<8xf32>
    %463 = vector.shape_cast %462 : vector<8xf32> to vector<8x1xf32>
    %cst_166 = arith.constant 3.200000e+01 : f32
    %464 = vector.broadcast %cst_166 : f32 to vector<8x1xf32>
    %465 = arith.divf %463, %464 : vector<8x1xf32>
    %466 = vector.broadcast %465 : vector<8x1xf32> to vector<8x32xf32>
    %467 = arith.subf %457, %466 : vector<8x32xf32>
    %468 = arith.mulf %467, %467 : vector<8x32xf32>
    %cst_167 = arith.constant dense<0.000000e+00> : vector<8xf32>
    %469 = vector.multi_reduction <add>, %468, %cst_167 [1] : vector<8x32xf32> to vector<8xf32>
    %470 = vector.shape_cast %469 : vector<8xf32> to vector<8x1xf32>
    %cst_168 = arith.constant 3.200000e+01 : f32
    %471 = vector.broadcast %cst_168 : f32 to vector<8x1xf32>
    %472 = arith.divf %470, %471 : vector<8x1xf32>
    %473 = vector.broadcast %465 : vector<8x1xf32> to vector<8x32xf32>
    %474 = arith.subf %457, %473 : vector<8x32xf32>
    %cst_169 = arith.constant 9.99999996E-13 : f32
    %475 = vector.broadcast %cst_169 : f32 to vector<8x1xf32>
    %476 = arith.addf %472, %475 : vector<8x1xf32>
    %477 = math.rsqrt %476 : vector<8x1xf32>
    %478 = vector.broadcast %477 : vector<8x1xf32> to vector<8x32xf32>
    %479 = arith.mulf %474, %478 : vector<8x32xf32>
    %480 = vector.broadcast %459 : vector<1x32xf32> to vector<8x32xf32>
    %481 = arith.mulf %479, %480 : vector<8x32xf32>
    %482 = vector.broadcast %461 : vector<1x32xf32> to vector<8x32xf32>
    %483 = arith.addf %481, %482 : vector<8x32xf32>
    %cst_170 = arith.constant dense<0.000000e+00> : vector<32xf32>
    %484 = vector.multi_reduction <add>, %483, %cst_170 [0] : vector<8x32xf32> to vector<32xf32>
    %485 = vector.shape_cast %484 : vector<32xf32> to vector<1x32xf32>
    %cst_171 = arith.constant 1.250000e-01 : f32
    %486 = vector.broadcast %cst_171 : f32 to vector<1x32xf32>
    %487 = arith.mulf %485, %486 : vector<1x32xf32>
    %c0_172 = arith.constant 0 : index
    %c0_173 = arith.constant 0 : index
    %488 = vector.load %arg18[%c0_172, %c0_173] : memref<1x32xf32, #tpu.memory_space<vmem>>, vector<1x32xf32>
    tpu.vector_store %arg18[%c0_172, %c0_173], %487 {strides = array<i32>} : memref<1x32xf32, #tpu.memory_space<vmem>>, vector<1x32xf32>,
    return
  }
}

</mosaic_0001>

<bundles_post_ra>
// kernel: bert_forward.1
= control target key start
LH: loop header
LB: loop body
LE: loop exit
PB: predicated region body
PF: predicated region fallthrough
CT: control target
= control target key end

     0   :  { %s3504_s0 = inlined_call_operand.vmem [shape: s32[8], index: 0, kind: input, shape index: {}]   ;;  %s3505_s1 = inlined_call_operand.vmem [shape: bf16[100,32], index: 1, kind: input, shape index: {}]   ;;  %s3506_s2 = inlined_call_operand.vmem [shape: f32[64,32], index: 2, kind: input, shape index: {}]   ;;  %s3507_s3 = inlined_call_operand.vmem [shape: f32[2,32], index: 3, kind: input, shape index: {}]   ;;  %s3508_s4 = inlined_call_operand.vmem [shape: f32[1,32], index: 4, kind: input, shape index: {}]   ;;  %s3509_s5 = inlined_call_operand.vmem [shape: f32[1,32], index: 5, kind: input, shape index: {}]   ;;  %s3510_s6 = inlined_call_operand.vmem [shape: bf16[2,32,96], index: 6, kind: input, shape index: {}]   ;;  %s3511_s7 = inlined_call_operand.vmem [shape: f32[2,1,96], index: 7, kind: input, shape index: {}]   ;;  %s3512_s8 = inlined_call_operand.vmem [shape: bf16[2,32,32], index: 8, kind: input, shape index: {}]   ;;  %s3513_s9 = inlined_call_operand.vmem [shape: f32[2,1,32], index: 9, kind: input, shape index: {}]   ;;  %s3514_s10 = inlined_call_operand.vmem [shape: f32[2,1,32], index: 10, kind: input, shape index: {}]   ;;  %s3515_s11 = inlined_call_operand.vmem [shape: f32[2,1,32], index: 11, kind: input, shape index: {}]   ;;  %s3516_s12 = inlined_call_operand.vmem [shape: bf16[2,32,64], index: 12, kind: input, shape index: {}]   ;;  %s3517_s13 = inlined_call_operand.vmem [shape: f32[2,1,64], index: 13, kind: input, shape index: {}]   ;;  %s3518_s14 = inlined_call_operand.vmem [shape: bf16[2,64,32], index: 14, kind: input, shape index: {}]   ;;  %s3519_s15 = inlined_call_operand.vmem [shape: f32[2,1,32], index: 15, kind: input, shape index: {}]   ;;  %s3520_s16 = inlined_call_operand.vmem [shape: f32[2,1,32], index: 16, kind: input, shape index: {}]   ;;  %s3521_s17 = inlined_call_operand.vmem [shape: f32[2,1,32], index: 17, kind: input, shape index: {}]   ;;  %s3522_s18 = inlined_call_operand.hbm [shape: f32[1,32], index: 18, kind: output, shape index: {}]  }
   0x1   :  { %3524 = sst [smem:[#allocation8_spill]] %s3504_s0 }
   0x2   :  { %3525 = sst [smem:[#allocation9_spill]] %s3505_s1 }
   0x3   :  { %3526 = sst [smem:[#allocation10_spill]] %s3506_s2 }
   0x4   :  { %23 = vsyncpa [#allocation4], 0 }
   0x5   :  { %24 = vsyncpa [#allocation3], 0  ;;  %s3527_s29 = sld [smem:[#allocation8_spill]] }
   0xb   :  { %s31_s30 = sshll.u32 %s3527_s29, 4  ;;  %s32_s30 = int_to_ptr.vmem [resolvable:$true] %s31_s30 }
   0xc   :  { %s2921_s0 = scalar_lea.vmem %s32_s30, 16  ;;  %p2926_p1 = scmp.lt.s32.totalorder %s32_s30, %s32_s30 }
   0xd   :  { %p2922_p0 = scmp.ne.s32.totalorder %s32_s30, %s2921_s0  ;;  %p2927_p2 = scmp.lt.s32.totalorder %s2921_s0, %s2921_s0 }
   0xf   :  { %p2928_p3 = por %p2927_p2, %p2926_p1 }
  0x11   :  { %p2929_p4 = pnand %p2928_p3, %p2922_p0 }
  0x13   :  { %2932 = shalt.err (!%p2929_p4)
}
  0x14   :  { %s2959_s19 = smov [#allocation2]  }
  0x15   :  { %34 = dma.vmem_to_smem %s32_s30, 16, %s2959_s19, [#allocation4]  }
  0x16   :  { %2955 = dma.done.wait [#allocation4], 16  }
  0x17   :  { %2956 = vsyncadd [#allocation4], 4294967280 }
  0x18   :  { %72 = sfence }
  0x19   :  { %s3528_s21 = sld [smem:[#allocation9_spill]]  ;;  %v2960_v1 = vmov 0.0   ;;  %vm2961_vm0 = vmmov 0   ;;  %v74_v3 = vlaneseq  ;;  %s79_s25 = sld [smem:[#allocation2]]  ;;  %vm171_vm3 = vcmask 1041408   ;;  %v2859_v44 = vld [vmem:[%s3510_s6] sm:$0xff]  }
  0x1a   :  { %2619 = vmatprep.subr.bf16.mxu0 %v2960_v1  ;;  %2637 = vmatprep.subr.bf16.mxu1 %v2960_v1  ;;  %s2432_s26 = sld [smem:[#allocation2 + $0x1]]  ;;  %s2433_s27 = sld [smem:[#allocation2 + $0x2]]  ;;  %vm167_vm11 = vcmask 818176   ;;  %v2448_v32 = vld [vmem:[%s3507_s3] ss:$0 sm:$0xff]  ;;  %vm223_vm12 = vcmask 261120  }
  0x1b   :  { %2633 = vmatprep.mubr.msk.bf16.mxu0 %vm2961_vm0, %v2960_v1  ;;  %2641 = vmatprep.mubr.msk.bf16.mxu1 %vm2961_vm0, %v2960_v1  ;;  %v75_v5 = vshrl.u32 %v74_v3, 7  ;;  %s3089_s28 = sld [smem:[#allocation2 + $0x3]]  ;;  %s3091_s29 = sld [smem:[#allocation2 + $0x4]]  ;;  %v77_v8 = vand.u32 127, %v74_v3  ;;  %v2860_v45 = vld [vmem:[%s3510_s6 + $0x8] sm:$0xff]   ;;  %vm366_vm13 = vcmask 1043456  }
  0x1c   :  { %s3093_s30 = sld [smem:[#allocation2 + $0x5]]  ;;  %s3098_s1 = sld [smem:[#allocation2 + $0x6]]  ;;  %2638 = vmatpush3.bf16.msra.mxu1 %v2859_v44  ;;  %v2449_v50 = vld [vmem:[%s3508_s4] ss:$0 sm:$0xff]  ;;  %vm362_vm14 = vcmask 64512   ;;  %vm1251_vm15 = vcmask 523264  }
  0x1d   :  { %s3100_s20 = sld [smem:[#allocation2 + $0x7]]  ;;  %vm78_vm1 = vcmp.eq.s32.totalorder %v75_v5, 0  ;;  %vm82_vm2 = vcmp.eq.s32.totalorder %v75_v5, 1  ;;  %vm86_vm4 = vcmp.eq.s32.totalorder %v75_v5, 2  ;;  %vm90_vm5 = vcmp.eq.s32.totalorder %v75_v5, 3  ;;  %2639 = vmatprep.subr.bf16.mxu1 %v2960_v1  ;;  %s2962_s4 = smov 96  }
  0x1e   :  { %vm94_vm6 = vcmp.eq.s32.totalorder %v75_v5, 4  ;;  %vm98_vm7 = vcmp.eq.s32.totalorder %v75_v5, 5  ;;  %vm102_vm8 = vcmp.eq.s32.totalorder %v75_v5, 6  ;;  %vm106_vm9 = vcmp.eq.s32.totalorder %v75_v5, 7  ;;  %v2450_v52 = vld [vmem:[%s3509_s5] ss:$0 sm:$0xff] }
  0x1f   :  { %v2852_v0 = vld [vmem:[%s3528_s21] sm:$0xff]   ;;  %v2853_v2 = vld [vmem:[%s3528_s21 + $0x8] sm:$0xff]   ;;  %v2854_v4 = vld [vmem:[%s3528_s21 + $0x10] sm:$0xff]   ;;  %v80_v9 = vstv %s79_s25  ;;  %s2963_s5 = smov 64   ;;  %s2968_s0 = smov 72  }
  0x20   :  { %2620 = vmatpush3.bf16.msra.mxu0 %v2852_v0  ;;  %v2855_v6 = vld [vmem:[%s3528_s21 + $0x18] sm:$0xff]   ;;  %v2856_v7 = vld [vmem:[%s3528_s21 + $0x20] sm:$0xff]   ;;  %v84_v10 = vstv %s2432_s26  ;;  %v81_v11 = vsel %vm78_vm1, %v80_v9, 0  ;;  %v88_v12 = vstv %s2433_s27  ;;  %2640 = vmatpush3.bf16.msra.mxu1 %v2860_v45  ;;  %s2964_s26 = smov 88   ;;  %s2966_s27 = smov 80  }
  0x21   :  { %2621 = vmatprep.subr.bf16.mxu0 %v2960_v1  ;;  %v92_v13 = vstv %s3089_s28  ;;  %v85_v14 = vsel %vm82_vm2, %v84_v10, %v81_v11  ;;  %v96_v15 = vstv %s3091_s29  ;;  %v2857_v16 = vld [vmem:[%s3528_s21 + $0x28] sm:$0xff]   ;;  %v2858_v19 = vld [vmem:[%s3528_s21 + $0x30] ss:$0 sps:$4 sm:$0x33]   ;;  %s3529_s28 = sld [smem:[#allocation10_spill]]  ;;  %2645 = vmatprep.subr.bf16.mxu1 %v2960_v1  ;;  %s2965_s21 = smov 120  }
  0x22   :  { %v89_v17 = vsel %vm86_vm4, %v88_v12, %v85_v14  ;;  %v100_v18 = vstv %s3093_s30  ;;  %v104_v21 = vstv %s3098_s1  ;;  %v173_v27 = vsel %vm171_vm3, %v2858_v19, 0  ;;  %v2451_v56 = vld [vmem:[%s3511_s7] ss:$0 sm:$0xff]  ;;  %s2969_s19 = smov 104   ;;  %s2970_s3 = smov 112  }
  0x23   :  { %v93_v20 = vsel %vm90_vm5, %v92_v13, %v89_v17  ;;  %v108_v23 = vstv %s3100_s20  ;;  %s2971_s22 = smov 48   ;;  %s2972_s29 = smov 40  }
  0x24   :  { %2622 = vmatpush3.bf16.msra.mxu0 %v2853_v2  ;;  %v97_v22 = vsel %vm94_vm6, %v96_v15, %v93_v20 }
  0x25   :  { %2623 = vmatprep.subr.bf16.mxu0 %v2960_v1  ;;  %v101_v24 = vsel %vm98_vm7, %v100_v18, %v97_v22  ;;  %v256_v22 = vld [vmem:[%s3512_s8] sm:$0xf] }
  0x26   :  { %v105_v25 = vsel %vm102_vm8, %v104_v21, %v101_v24 }
  0x27   :  { %v109_v26 = vsel %vm106_vm9, %v108_v23, %v105_v25  ;;  %v127_v30 = vld [vmem:[%s3529_s28] sm:$0xff]  ;;  %s2967_s28 = smov 56   ;;  %v477_v23 = vsel %vm366_vm13, %v256_v22, 0 }
  0x28   :  { %2624 = vmatpush3.bf16.msra.mxu0 %v2854_v4  ;;  %vm110_vm10 = vcmp.eq.s32.totalorder %v77_v8, %v109_v26 }
  0x29   :  { %2625 = vmatprep.subr.bf16.mxu0 %v2960_v1  ;;  %v2439_v28 = vsel %vm110_vm10, 1.0, %v2960_v1 }
  0x2a   :  { %v126_v29 = vpack.c.bf16 %v2439_v28, %v2439_v28 }
  0x2c   :  { %2626 = vmatpush3.bf16.msra.mxu0 %v2855_v6 }
  0x2d   :  { %2627 = vmatprep.subr.bf16.mxu0 %v2960_v1 }
  0x30   :  { %2628 = vmatpush3.bf16.msra.mxu0 %v2856_v7 }
  0x31   :  { %2629 = vmatprep.subr.bf16.mxu0 %v2960_v1 }
  0x34   :  { %2630 = vmatpush3.bf16.msra.mxu0 %v2857_v16 }
  0x35   :  { %2631 = vmatprep.subr.bf16.mxu0 %v2960_v1 }
  0x38   :  { %2632 = vmatpush3.bf16.msra.mxu0 %v173_v27 }
  0x39   :  { %2675 = vmatprep.subr.bf16.mxu0 %v2960_v1 }
  0x3b   :  { %2634 = vmatmul.mubr.msk.bf16.vlgmr.msra.gmra.mrb[0].mxu0 %vm167_vm11, %v126_v29 }
  0x3c   :  { %2677 = vmatprep.mubr.msk.bf16.mxu0 %vm2961_vm0, %v2960_v1 }
 0x10e   :  { %v209_v31 = vpop.f32.mrb[0].mxu0 }
 0x10f   :  { %v210_v33 = vadd.f32 %v209_v31, %v127_v30  ;;  %v2635_v34 = vpop.f32.mrb[1].mxu0 }
 0x110   :  { %v212_v35 = vpop.f32.mrb[2].mxu0 }
 0x111   :  { %v2636_v36 = vpop.f32.mrb[3].mxu0  ;;  %v220_v37 = vadd.f32 %v2448_v32, %v210_v33 }
 0x113   :  { %v224_v38 = vsel %vm223_vm12, %v220_v37, 0.0 }
 0x114   :  { %225 = vadd.xlane.f32.xlu0 %v224_v38 }
 0x1a1   :  { %v226_v39 = vpop.xlane.xlu0 %225 }
 0x1a2   :  { %v228_v40 = vmul.f32 0.03125, %v226_v39 }
 0x1a4   :  { %v229_v41 = vsub.f32 %v220_v37, %v228_v40 }
 0x1a6   :  { %v230_v42 = vmul.f32 %v229_v41, %v229_v41 }
 0x1a8   :  { %v231_v43 = vsel %vm223_vm12, %v230_v42, 0.0 }
 0x1a9   :  { %232 = vadd.xlane.f32.xlu0 %v231_v43 }
 0x236   :  { %v233_v46 = vpop.xlane.xlu0 %232 }
 0x237   :  { %v234_v47 = vmul.f32 0.03125, %v233_v46 }
 0x239   :  { %v235_v48 = vadd.f32 1e-12, %v234_v47 }
 0x23b   :  { %2875 = vrsqrt.f32 %v235_v48 }
 0x245   :  { %v2876_v49 = vpop.eup %2875 }
 0x246   :  { %v237_v51 = vmul.f32 %v2876_v49, %v229_v41 }
 0x248   :  { %v244_v53 = vmul.f32 %v2449_v50, %v237_v51 }
 0x24a   :  { %v3147_v54 = vadd.f32 %v2450_v52, %v244_v53 }
 0x24c   :  { %v260_v55 = vpack.c.bf16 %v3147_v54, %v3147_v54 }
 0x24e   :  { %2642 = vmatmul.mubr.msk.bf16.vlgmr.msra.gmra.mrb[0].mxu1 %vm223_vm12, %v260_v55 }
 0x24f   :  { %2647 = vmatprep.mubr.msk.bf16.mxu1 %vm2961_vm0, %v2960_v1 }
 0x321   :  { %v317_v57 = vpop.f32.mrb[0].mxu1 }
 0x322   :  { %v318_v58 = vadd.f32 %v2451_v56, %v317_v57  ;;  %v2643_v59 = vpop.f32.mrb[1].mxu1 }
 0x323   :  { %v320_v60 = vpop.f32.mrb[2].mxu1 }
 0x324   :  { %325 = vrot.lane.b32.xlu1 %v318_v58, %s2962_s4  ;;  %v2644_v61 = vpop.f32.mrb[3].mxu1  ;;  %v3159_v3 = vpack.c.bf16 %v318_v58, %v318_v58 }
 0x325   :  { %v257_v61 = vld [vmem:[%s3512_s8 + $0x4] sm:$0xf] }
 0x396   :  { %v326_v62 = vpop.permute.xlu1 %325 }
 0x397   :  { %328 = vxpose.xlu1.b32.start.end [1/1] (short) (narrow) %v326_v62, 8  ;;  %v676_v62 = vsel %vm366_vm13, %v257_v61, 0 }
 0x398   :  { %2676 = vmatpush3.bf16.msra.mxu0 %v676_v62 }
 0x399   :  { %2687 = vmatprep.subr.bf16.mxu0 %v2960_v1 }
 0x417   :  { %v344_v63 = vpop.trf.xlu1 }
 0x418   :  { %v361_v0 = vpack.c.bf16 %v344_v63, %v344_v63 }
 0x41a   :  { %v368_v2 = vsel %vm366_vm13, %v361_v0, 0 }
 0x41b   :  { %2646 = vmatpush3.bf16.msra.mxu1 %v368_v2 }
 0x41c   :  { %2651 = vmatprep.subr.bf16.mxu1 %v2960_v1 }
 0x41e   :  { %2648 = vmatmul.mubr.msk.bf16.vlgmr.msra.gmra.mrb[4].mxu1 %vm362_vm14, %v3159_v3 }
 0x41f   :  { %2653 = vmatprep.mubr.msk.bf16.mxu1 %vm2961_vm0, %v2960_v1 }
 0x4f1   :  { %v404_v4 = vpop.f32.mrb[4].mxu1 }
 0x4f2   :  { %v410_v5 = vmul.f32 0.35355338, %v404_v4  ;;  %v2649_v6 = vpop.f32.mrb[5].mxu1 }
 0x4f3   :  { %v407_v7 = vpop.f32.mrb[6].mxu1 }
 0x4f4   :  { %v2650_v8 = vpop.f32.mrb[7].mxu1  ;;  %v411_v9 = vsel %vm362_vm14, %v410_v5, -inf }
 0x4f5   :  { %412 = vmax.xlane.f32.xlu0 %v411_v9 }
 0x582   :  { %v413_v10 = vpop.xlane.xlu0 %412 }
 0x583   :  { %v414_v11 = vsub.f32 %v410_v5, %v413_v10 }
 0x585   :  { %v415_v12 = vmul.f32 1.442695, %v414_v11 }
 0x587   :  { %2877 = vpow2.f32 %v415_v12 }
 0x591   :  { %v2878_v13 = vpop.eup %2877 }
 0x592   :  { %v417_v14 = vsel %vm362_vm14, %v2878_v13, 0.0 }
 0x593   :  { %418 = vadd.xlane.f32.xlu0 %v417_v14 }
 0x5a9   :  { %424 = vrot.lane.b32.xlu0 %v3159_v3, %s2963_s5 }
 0x5ad   :  { %526 = vrot.lane.b32.xlu0 %v318_v58, %s2964_s26 }
 0x5b1   :  { %562 = vrot.lane.b32.xlu0 %v3159_v3, %s2965_s21 }
 0x620   :  { %v419_v15 = vpop.xlane.xlu0 %418 }
 0x621   :  { %2879 = vrcp.f32 %v419_v15 }
 0x624   :  { %v425_v16 = vpop.permute.xlu0 %424 }
 0x625   :  { %v430_v17 = vsel %vm366_vm13, %v425_v16, 0 }
 0x626   :  { %2652 = vmatpush3.bf16.msra.mxu1 %v430_v17  ;;  %v2458_v17 = vld [vmem:[%s3513_s9] ss:$0 sm:$0xff] }
 0x627   :  { %2657 = vmatprep.subr.bf16.mxu1 %v2960_v1 }
 0x628   :  { %v527_v18 = vpop.permute.xlu0 %526 }
 0x629   :  { %529 = vxpose.xlu1.b32.start.end [1/1] (short) (narrow) %v527_v18, 8 }
 0x62b   :  { %v2880_v19 = vpop.eup %2879 }
 0x62c   :  { %v421_v20 = vmul.f32 %v2880_v19, %v2878_v13  ;;  %v563_v34 = vpop.permute.xlu0 %562 }
 0x62e   :  { %v422_v21 = vpack.c.bf16 %v421_v20, %v421_v20 }
 0x630   :  { %2654 = vmatmul.mubr.msk.bf16.vlgmr.msra.gmra.mrb[8].mxu1 %vm362_vm14, %v422_v21 }
 0x631   :  { %2659 = vmatprep.mubr.msk.bf16.mxu1 %vm2961_vm0, %v2960_v1  ;;  %2658 = vmatpush3.bf16.msra.mxu1 %v477_v23 }
 0x632   :  { %2663 = vmatprep.subr.bf16.mxu1 %v2960_v1 }
 0x647   :  { %719 = vrot.lane.b32.xlu1 %v318_v58, %s2966_s27 }
 0x64b   :  { %623 = vrot.lane.b32.xlu1 %v3159_v3, %s2967_s28 }
 0x6a9   :  { %v545_v24 = vpop.trf.xlu1 }
 0x6aa   :  { %v561_v26 = vpack.c.bf16 %v545_v24, %v545_v24 }
 0x6ac   :  { %v568_v28 = vsel %vm366_vm13, %v561_v26, 0 }
 0x6b9   :  { %v720_v25 = vpop.permute.xlu1 %719 }
 0x6ba   :  { %722 = vxpose.xlu1.b32.start.end [1/1] (short) (narrow) %v720_v25, 8 }
 0x6bd   :  { %v624_v33 = vpop.permute.xlu1 %623 }
 0x6be   :  { %v629_v35 = vsel %vm366_vm13, %v624_v33, 0 }
 0x6d8   :  { %912 = vrot.lane.b32.xlu1 %v318_v58, %s2968_s0 }
 0x6dc   :  { %948 = vrot.lane.b32.xlu1 %v3159_v3, %s2969_s19 }
 0x703   :  { %v466_v27 = vpop.f32.mrb[8].mxu1 }
 0x704   :  { %v472_v29 = vpack.c.bf16 %v466_v27, %v466_v27  ;;  %v2655_v30 = vpop.f32.mrb[9].mxu1 }
 0x705   :  { %v469_v31 = vpop.f32.mrb[10].mxu1 }
 0x706   :  { %v2656_v32 = vpop.f32.mrb[11].mxu1  ;;  %2660 = vmatmul.mubr.msk.bf16.vlgmr.msra.gmra.mrb[12].mxu1 %vm362_vm14, %v472_v29 }
 0x707   :  { %2664 = vmatpush3.bf16.msra.mxu1 %v568_v28  ;;  %2665 = vmatprep.mubr.msk.bf16.mxu1 %vm2961_vm0, %v2960_v1 }
 0x708   :  { %2669 = vmatprep.subr.bf16.mxu1 %v2960_v1 }
 0x70e   :  { %2666 = vmatmul.mubr.msk.bf16.vlgmr.msra.gmra.mrb[16].mxu1 %vm362_vm14, %v563_v34  ;;  %v258_v34 = vld [vmem:[%s3512_s8 + $0x8] sm:$0xf] }
 0x70f   :  { %2670 = vmatpush3.bf16.msra.mxu1 %v629_v35  ;;  %2671 = vmatprep.mubr.msk.bf16.mxu1 %vm2961_vm0, %v2960_v1  ;;  %v869_v35 = vsel %vm366_vm13, %v258_v34, 0  ;;  %v2866_v34 = vld [vmem:[%s3518_s14 + $0x18] sm:$0xff]  }
 0x710   :  { %2681 = vmatprep.subr.bf16.mxu1 %v2960_v1 }
 0x73a   :  { %v738_v36 = vpop.trf.xlu1 }
 0x73b   :  { %v754_v55 = vpack.c.bf16 %v738_v36, %v738_v36 }
 0x73d   :  { %v761_v58 = vsel %vm366_vm13, %v754_v55, 0 }
 0x74a   :  { %v913_v37 = vpop.permute.xlu1 %912 }
 0x74b   :  { %915 = vxpose.xlu1.b32.start.end [1/1] (short) (narrow) %v913_v37, 8 }
 0x74e   :  { %v949_v25 = vpop.permute.xlu1 %948 }
 0x7cb   :  { %v931_v28 = vpop.trf.xlu1 }
 0x7cc   :  { %v947_v29 = vpack.c.bf16 %v931_v28, %v931_v28 }
 0x7ce   :  { %v954_v33 = vsel %vm366_vm13, %v947_v29, 0 }
 0x7d9   :  { %v513_v38 = vpop.f32.mrb[12].mxu1 }
 0x7da   :  { %v2661_v39 = vpop.f32.mrb[13].mxu1  ;;  %v525_v18 = vadd.f32 %v2458_v17, %v513_v38 }
 0x7db   :  { %v516_v40 = vpop.f32.mrb[14].mxu1 }
 0x7dc   :  { %v2662_v41 = vpop.f32.mrb[15].mxu1 }
 0x7e1   :  { %v604_v42 = vpop.f32.mrb[16].mxu1 }
 0x7e2   :  { %v610_v43 = vmul.f32 0.35355338, %v604_v42  ;;  %v2667_v44 = vpop.f32.mrb[17].mxu1 }
 0x7e3   :  { %v607_v45 = vpop.f32.mrb[18].mxu1 }
 0x7e4   :  { %v2668_v46 = vpop.f32.mrb[19].mxu1  ;;  %v611_v47 = vsel %vm362_vm14, %v610_v43, -inf }
 0x7e5   :  { %612 = vmax.xlane.f32.xlu0 %v611_v47 }
 0x872   :  { %v613_v48 = vpop.xlane.xlu0 %612 }
 0x873   :  { %v614_v49 = vsub.f32 %v610_v43, %v613_v48 }
 0x875   :  { %v615_v50 = vmul.f32 1.442695, %v614_v49 }
 0x877   :  { %2881 = vpow2.f32 %v615_v50 }
 0x881   :  { %v2882_v51 = vpop.eup %2881 }
 0x882   :  { %v617_v52 = vsel %vm362_vm14, %v2882_v51, 0.0 }
 0x883   :  { %618 = vadd.xlane.f32.xlu0 %v617_v52 }
 0x899   :  { %755 = vrot.lane.b32.xlu0 %v3159_v3, %s2970_s3 }
 0x910   :  { %v619_v53 = vpop.xlane.xlu0 %618 }
 0x911   :  { %2883 = vrcp.f32 %v619_v53 }
 0x914   :  { %v756_v60 = vpop.permute.xlu0 %755 }
 0x91b   :  { %v2884_v56 = vpop.eup %2883 }
 0x91c   :  { %v621_v57 = vmul.f32 %v2884_v56, %v2882_v51 }
 0x91e   :  { %v622_v59 = vpack.c.bf16 %v621_v57, %v621_v57 }
 0x920   :  { %2672 = vmatmul.mubr.msk.bf16.vlgmr.msra.gmra.mrb[20].mxu1 %vm362_vm14, %v622_v59 }
 0x921   :  { %2682 = vmatpush3.bf16.msra.mxu1 %v761_v58  ;;  %2683 = vmatprep.mubr.msk.bf16.mxu1 %vm2961_vm0, %v2960_v1 }
 0x922   :  { %2693 = vmatprep.subr.bf16.mxu1 %v2960_v1 }
 0x928   :  { %2684 = vmatmul.mubr.msk.bf16.vlgmr.msra.gmra.mrb[24].mxu1 %vm362_vm14, %v756_v60 }
 0x929   :  { %2695 = vmatprep.mubr.msk.bf16.mxu1 %vm2961_vm0, %v2960_v1  ;;  %2694 = vmatpush3.bf16.msra.mxu1 %v869_v35  ;;  %v2470_v35 = vld [vmem:[%s3517_s13] ss:$0 sm:$0xff] }
 0x92a   :  { %2705 = vmatprep.subr.bf16.mxu1 %v2960_v1 }
 0x9f3   :  { %v665_v63 = vpop.f32.mrb[20].mxu1 }
 0x9f4   :  { %v671_v0 = vpack.c.bf16 %v665_v63, %v665_v63  ;;  %v2673_v2 = vpop.f32.mrb[21].mxu1 }
 0x9f5   :  { %v668_v4 = vpop.f32.mrb[22].mxu1 }
 0x9f6   :  { %v2674_v5 = vpop.f32.mrb[23].mxu1  ;;  %2678 = vmatmul.mubr.msk.bf16.vlgmr.msra.gmra.mrb[4].mxu0 %vm362_vm14, %v671_v0 }
 0x9f7   :  { %2689 = vmatprep.mubr.msk.bf16.mxu0 %vm2961_vm0, %v2960_v1 }
 0x9fb   :  { %v797_v6 = vpop.f32.mrb[24].mxu1 }
 0x9fc   :  { %v803_v7 = vmul.f32 0.35355338, %v797_v6  ;;  %v2685_v8 = vpop.f32.mrb[25].mxu1 }
 0x9fd   :  { %v800_v9 = vpop.f32.mrb[26].mxu1 }
 0x9fe   :  { %v2686_v10 = vpop.f32.mrb[27].mxu1  ;;  %v804_v11 = vsel %vm362_vm14, %v803_v7, -inf }
 0x9ff   :  { %805 = vmax.xlane.f32.xlu0 %v804_v11 }
 0xa8c   :  { %v806_v12 = vpop.xlane.xlu0 %805 }
 0xa8d   :  { %v807_v13 = vsub.f32 %v803_v7, %v806_v12 }
 0xa8f   :  { %v808_v14 = vmul.f32 1.442695, %v807_v13 }
 0xa91   :  { %2885 = vpow2.f32 %v808_v14 }
 0xa9b   :  { %v2886_v15 = vpop.eup %2885 }
 0xa9c   :  { %v810_v16 = vsel %vm362_vm14, %v2886_v15, 0.0 }
 0xa9d   :  { %811 = vadd.xlane.f32.xlu0 %v810_v16 }
 0xab3   :  { %816 = vrot.lane.b32.xlu0 %v3159_v3, %s2971_s22 }
 0xac9   :  { %v712_v19 = vpop.f32.mrb[4].mxu0 }
 0xaca   :  { %v718_v20 = vadd.f32 %v712_v19, %v525_v18  ;;  %v2679_v21 = vpop.f32.mrb[5].mxu0 }
 0xacb   :  { %v715_v22 = vpop.f32.mrb[6].mxu0  ;;  %v2862_v21 = vld [vmem:[%s3516_s12 + $0x8] sm:$0xff]  }
 0xacc   :  { %v2680_v23 = vpop.f32.mrb[7].mxu0 }
 0xb2a   :  { %v812_v24 = vpop.xlane.xlu0 %811 }
 0xb2b   :  { %2887 = vrcp.f32 %v812_v24 }
 0xb2e   :  { %v817_v26 = vpop.permute.xlu0 %816 }
 0xb2f   :  { %v822_v27 = vsel %vm366_vm13, %v817_v26, 0 }
 0xb30   :  { %2688 = vmatpush3.bf16.msra.mxu0 %v822_v27  ;;  %v2469_v27 = vld [vmem:[%s3515_s11] ss:$0 sm:$0xff] }
 0xb31   :  { %2699 = vmatprep.subr.bf16.mxu0 %v2960_v1 }
 0xb35   :  { %v2888_v30 = vpop.eup %2887 }
 0xb36   :  { %v814_v31 = vmul.f32 %v2888_v30, %v2886_v15 }
 0xb38   :  { %v815_v32 = vpack.c.bf16 %v814_v31, %v814_v31  ;;  %v2863_v31 = vld [vmem:[%s3518_s14] sm:$0xff]  }
 0xb3a   :  { %2690 = vmatmul.mubr.msk.bf16.vlgmr.msra.gmra.mrb[8].mxu0 %vm362_vm14, %v815_v32  ;;  %v2864_v32 = vld [vmem:[%s3518_s14 + $0x8] sm:$0xff]  }
 0xb3b   :  { %2700 = vmatpush3.bf16.msra.mxu0 %v954_v33  ;;  %2701 = vmatprep.mubr.msk.bf16.mxu0 %vm2961_vm0, %v2960_v1  ;;  %v2865_v33 = vld [vmem:[%s3518_s14 + $0x10] sm:$0xff]  }
 0xb3c   :  { %2711 = vmatprep.subr.bf16.mxu0 %v2960_v1 }
 0xb42   :  { %2702 = vmatmul.mubr.msk.bf16.vlgmr.msra.gmra.mrb[12].mxu0 %vm362_vm14, %v949_v25  ;;  %v2468_v25 = vld [vmem:[%s3514_s10] ss:$0 sm:$0xff] }
 0xb43   :  { %2713 = vmatprep.mubr.msk.bf16.mxu0 %vm2961_vm0, %v2960_v1 }
 0xc0d   :  { %v858_v36 = vpop.f32.mrb[8].mxu0 }
 0xc0e   :  { %v864_v37 = vpack.c.bf16 %v858_v36, %v858_v36  ;;  %v2691_v38 = vpop.f32.mrb[9].mxu0 }
 0xc0f   :  { %v861_v39 = vpop.f32.mrb[10].mxu0 }
 0xc10   :  { %v2692_v40 = vpop.f32.mrb[11].mxu0  ;;  %2696 = vmatmul.mubr.msk.bf16.vlgmr.msra.gmra.mrb[28].mxu1 %vm362_vm14, %v864_v37 }
 0xc11   :  { %2707 = vmatprep.mubr.msk.bf16.mxu1 %vm2961_vm0, %v2960_v1 }
 0xc15   :  { %v990_v41 = vpop.f32.mrb[12].mxu0 }
 0xc16   :  { %v996_v42 = vmul.f32 0.35355338, %v990_v41  ;;  %v2703_v43 = vpop.f32.mrb[13].mxu0 }
 0xc17   :  { %v993_v44 = vpop.f32.mrb[14].mxu0 }
 0xc18   :  { %v2704_v45 = vpop.f32.mrb[15].mxu0  ;;  %v997_v46 = vsel %vm362_vm14, %v996_v42, -inf }
 0xc19   :  { %998 = vmax.xlane.f32.xlu0 %v997_v46 }
 0xca6   :  { %v999_v47 = vpop.xlane.xlu0 %998 }
 0xca7   :  { %v1000_v48 = vsub.f32 %v996_v42, %v999_v47 }
 0xca9   :  { %v1001_v49 = vmul.f32 1.442695, %v1000_v48 }
 0xcab   :  { %2889 = vpow2.f32 %v1001_v49 }
 0xcb5   :  { %v2890_v50 = vpop.eup %2889 }
 0xcb6   :  { %v1003_v51 = vsel %vm362_vm14, %v2890_v50, 0.0 }
 0xcb7   :  { %1004 = vadd.xlane.f32.xlu0 %v1003_v51  ;;  %v2474_v51 = vld [vmem:[%s3519_s15] ss:$0 sm:$0xff] }
 0xccd   :  { %1009 = vrot.lane.b32.xlu0 %v3159_v3, %s2972_s29  ;;  %v259_v3 = vld [vmem:[%s3512_s8 + $0xc] sm:$0xf] }
 0xcce   :  { %v1062_v0 = vsel %vm366_vm13, %v259_v3, 0 }
 0xccf   :  { %2712 = vmatpush3.bf16.msra.mxu0 %v1062_v0  ;;  %v2867_v0 = vld [vmem:[%s3510_s6 + $0x10] sm:$0xff]  }
 0xcd0   :  { %2725 = vmatprep.subr.bf16.mxu0 %v2960_v1 }
 0xce3   :  { %v905_v52 = vpop.f32.mrb[28].mxu1 }
 0xce4   :  { %v911_v53 = vadd.f32 %v905_v52, %v718_v20  ;;  %v2697_v55 = vpop.f32.mrb[29].mxu1  ;;  %v2861_v20 = vld [vmem:[%s3516_s12] sm:$0xff]  }
 0xce5   :  { %v908_v56 = vpop.f32.mrb[30].mxu1 }
 0xce6   :  { %v2698_v57 = vpop.f32.mrb[31].mxu1 }
 0xd44   :  { %v1005_v58 = vpop.xlane.xlu0 %1004 }
 0xd45   :  { %2891 = vrcp.f32 %v1005_v58 }
 0xd48   :  { %v1010_v59 = vpop.permute.xlu0 %1009 }
 0xd49   :  { %v1015_v60 = vsel %vm366_vm13, %v1010_v59, 0 }
 0xd4a   :  { %2706 = vmatpush3.bf16.msra.mxu1 %v1015_v60 }
 0xd4b   :  { %2717 = vmatprep.subr.bf16.mxu1 %v2960_v1 }
 0xd4f   :  { %v2892_v61 = vpop.eup %2891 }
 0xd50   :  { %v1007_v62 = vmul.f32 %v2892_v61, %v2890_v50 }
 0xd52   :  { %v1008_v63 = vpack.c.bf16 %v1007_v62, %v1007_v62 }
 0xd54   :  { %2708 = vmatmul.mubr.msk.bf16.vlgmr.msra.gmra.mrb[32].mxu1 %vm362_vm14, %v1008_v63 }
 0xd55   :  { %2721 = vmatprep.mubr.msk.bf16.mxu1 %vm2961_vm0, %v2960_v1  ;;  %2718 = vmatpush3.bf16.msra.mxu1 %v2861_v20 }
 0xd56   :  { %2719 = vmatprep.subr.bf16.mxu1 %v2960_v1 }
 0xd59   :  { %2720 = vmatpush3.bf16.msra.mxu1 %v2862_v21 }
 0xd5a   :  { %2737 = vmatprep.subr.bf16.mxu1 %v2960_v1 }
 0xe27   :  { %v1051_v2 = vpop.f32.mrb[32].mxu1 }
 0xe28   :  { %v1057_v4 = vpack.c.bf16 %v1051_v2, %v1051_v2  ;;  %v2709_v5 = vpop.f32.mrb[33].mxu1  ;;  %v2868_v2 = vld [vmem:[%s3510_s6 + $0x18] sm:$0xff]  }
 0xe29   :  { %v1054_v6 = vpop.f32.mrb[34].mxu1 }
 0xe2a   :  { %v2710_v7 = vpop.f32.mrb[35].mxu1  ;;  %2714 = vmatmul.mubr.msk.bf16.vlgmr.msra.gmra.mrb[16].mxu0 %vm362_vm14, %v1057_v4 }
 0xe2b   :  { %2733 = vmatprep.mubr.msk.bf16.mxu0 %vm2961_vm0, %v2960_v1  ;;  %2726 = vmatpush3.bf16.msra.mxu0 %v2863_v31 }
 0xe2c   :  { %2727 = vmatprep.subr.bf16.mxu0 %v2960_v1 }
 0xe2f   :  { %2728 = vmatpush3.bf16.msra.mxu0 %v2864_v32 }
 0xe30   :  { %2729 = vmatprep.subr.bf16.mxu0 %v2960_v1 }
 0xe33   :  { %2730 = vmatpush3.bf16.msra.mxu0 %v2865_v33 }
 0xe34   :  { %2731 = vmatprep.subr.bf16.mxu0 %v2960_v1 }
 0xe37   :  { %2732 = vmatpush3.bf16.msra.mxu0 %v2866_v34 }
 0xe38   :  { %2751 = vmatprep.subr.bf16.mxu0 %v2960_v1 }
 0xefd   :  { %v1098_v8 = vpop.f32.mrb[16].mxu0 }
 0xefe   :  { %v1104_v9 = vadd.f32 %v1098_v8, %v911_v53  ;;  %v2715_v10 = vpop.f32.mrb[17].mxu0  ;;  %v2480_v8 = vld [vmem:[%s3520_s16] ss:$0 sm:$0xff] }
 0xeff   :  { %v1101_v11 = vpop.f32.mrb[18].mxu0  ;;  %v2481_v10 = vld [vmem:[%s3521_s17] ss:$0 sm:$0xff] }
 0xf00   :  { %v2716_v12 = vpop.f32.mrb[19].mxu0  ;;  %v1105_v13 = vadd.f32 %v1104_v9, %v3147_v54 }
 0xf02   :  { %v1108_v14 = vsel %vm223_vm12, %v1105_v13, 0.0 }
 0xf03   :  { %1109 = vadd.xlane.f32.xlu1 %v1108_v14  ;;  %v2491_v14 = vld [vmem:[%s3511_s7 + $0x1] ss:$0 sm:$0xff] }
 0xf90   :  { %v1110_v15 = vpop.xlane.xlu1 %1109 }
 0xf91   :  { %v1111_v16 = vmul.f32 0.03125, %v1110_v15 }
 0xf93   :  { %v1112_v17 = vsub.f32 %v1105_v13, %v1111_v16 }
 0xf95   :  { %v1113_v18 = vmul.f32 %v1112_v17, %v1112_v17 }
 0xf97   :  { %v1114_v19 = vsel %vm223_vm12, %v1113_v18, 0.0 }
 0xf98   :  { %1115 = vadd.xlane.f32.xlu0 %v1114_v19 }
0x1025   :  { %v1116_v54 = vpop.xlane.xlu0 %1115 }
0x1026   :  { %v1117_v22 = vmul.f32 0.03125, %v1116_v54 }
0x1028   :  { %v1118_v23 = vadd.f32 1e-12, %v1117_v22 }
0x102a   :  { %2893 = vrsqrt.f32 %v1118_v23 }
0x1034   :  { %v2894_v24 = vpop.eup %2893 }
0x1035   :  { %v1120_v26 = vmul.f32 %v2894_v24, %v1112_v17 }
0x1037   :  { %v1127_v28 = vmul.f32 %v2468_v25, %v1120_v26 }
0x1039   :  { %v1134_v29 = vadd.f32 %v2469_v27, %v1127_v28 }
0x103b   :  { %v1139_v30 = vpack.c.bf16 %v1134_v29, %v1134_v29 }
0x103d   :  { %2722 = vmatmul.mubr.msk.bf16.vlgmr.msra.gmra.mrb[36].mxu1 %vm223_vm12, %v1139_v30 }
0x103e   :  { %2741 = vmatprep.mubr.msk.bf16.mxu1 %vm2961_vm0, %v2960_v1  ;;  %2738 = vmatpush3.bf16.msra.mxu1 %v2867_v0 }
0x103f   :  { %2739 = vmatprep.subr.bf16.mxu1 %v2960_v1 }
0x1042   :  { %2740 = vmatpush3.bf16.msra.mxu1 %v2868_v2 }
0x1043   :  { %2745 = vmatprep.subr.bf16.mxu1 %v2960_v1 }
0x1110   :  { %v1196_v36 = vpop.f32.mrb[36].mxu1 }
0x1111   :  { %v1197_v37 = vadd.f32 %v2470_v35, %v1196_v36  ;;  %v2723_v38 = vpop.f32.mrb[37].mxu1 }
0x1112   :  { %v1199_v39 = vpop.f32.mrb[38].mxu1 }
0x1113   :  { %v1202_v40 = vmul.f32 %v1197_v37, %v1197_v37  ;;  %v2724_v41 = vpop.f32.mrb[39].mxu1 }
0x1115   :  { %v1203_v42 = vmul.f32 %v1202_v40, %v1197_v37 }
0x1117   :  { %v1204_v43 = vmul.f32 0.044715, %v1203_v42 }
0x1119   :  { %v1205_v44 = vadd.f32 %v1204_v43, %v1197_v37 }
0x111b   :  { %v1206_v45 = vmul.f32 0.7978846, %v1205_v44 }
0x111d   :  { %2895 = vtanh.f32 %v1206_v45 }
0x1127   :  { %v2896_v46 = vpop.eup %2895 }
0x1128   :  { %v1208_v47 = vadd.f32 1.0, %v2896_v46  ;;  %v2486_v46 = vld [vmem:[%s3512_s8 + $0x10] sm:$0xf] }
0x112a   :  { %v1209_v48 = vmul.f32 0.5, %v1208_v47  ;;  %v1552_v47 = vsel %vm366_vm13, %v2486_v46, 0 }
0x112c   :  { %v1210_v49 = vmul.f32 %v1209_v48, %v1197_v37 }
0x112e   :  { %v1219_v50 = vpack.c.bf16 %v1210_v49, %v1210_v49 }
0x1130   :  { %2734 = vmatmul.mubr.msk.bf16.vlgmr.msra.gmra.mrb[20].mxu0 %vm1251_vm15, %v1219_v50 }
0x1131   :  { %2753 = vmatprep.mubr.msk.bf16.mxu0 %vm2961_vm0, %v2960_v1 }
0x1203   :  { %v1289_v52 = vpop.f32.mrb[20].mxu0 }
0x1204   :  { %v1290_v53 = vadd.f32 %v2474_v51, %v1289_v52  ;;  %v2735_v55 = vpop.f32.mrb[21].mxu0 }
0x1205   :  { %v1292_v56 = vpop.f32.mrb[22].mxu0 }
0x1206   :  { %v2736_v57 = vpop.f32.mrb[23].mxu0  ;;  %v1295_v58 = vadd.f32 %v1290_v53, %v1134_v29 }
0x1208   :  { %v1298_v59 = vsel %vm223_vm12, %v1295_v58, 0.0 }
0x1209   :  { %1299 = vadd.xlane.f32.xlu1 %v1298_v59 }
0x1296   :  { %v1300_v60 = vpop.xlane.xlu1 %1299 }
0x1297   :  { %v1301_v61 = vmul.f32 0.03125, %v1300_v60 }
0x1299   :  { %v1302_v62 = vsub.f32 %v1295_v58, %v1301_v61 }
0x129b   :  { %v1303_v63 = vmul.f32 %v1302_v62, %v1302_v62 }
0x129d   :  { %v1304_v3 = vsel %vm223_vm12, %v1303_v63, 0.0 }
0x129e   :  { %1305 = vadd.xlane.f32.xlu1 %v1304_v3 }
0x132b   :  { %v1306_v4 = vpop.xlane.xlu1 %1305 }
0x132c   :  { %v1307_v5 = vmul.f32 0.03125, %v1306_v4 }
0x132e   :  { %v1308_v6 = vadd.f32 1e-12, %v1307_v5 }
0x1330   :  { %2897 = vrsqrt.f32 %v1308_v6 }
0x133a   :  { %v2898_v7 = vpop.eup %2897 }
0x133b   :  { %v1310_v9 = vmul.f32 %v2898_v7, %v1302_v62 }
0x133d   :  { %v1317_v11 = vmul.f32 %v2480_v8, %v1310_v9 }
0x133f   :  { %v3322_v12 = vadd.f32 %v2481_v10, %v1317_v11 }
0x1341   :  { %v1335_v13 = vpack.c.bf16 %v3322_v12, %v3322_v12 }
0x1343   :  { %2742 = vmatmul.mubr.msk.bf16.vlgmr.msra.gmra.mrb[40].mxu1 %vm223_vm12, %v1335_v13 }
0x1344   :  { %2747 = vmatprep.mubr.msk.bf16.mxu1 %vm2961_vm0, %v2960_v1 }
0x1416   :  { %v1393_v15 = vpop.f32.mrb[40].mxu1 }
0x1417   :  { %v3332_v16 = vadd.f32 %v2491_v14, %v1393_v15  ;;  %v2743_v17 = vpop.f32.mrb[41].mxu1 }
0x1418   :  { %v1396_v18 = vpop.f32.mrb[42].mxu1 }
0x1419   :  { %1402 = vrot.lane.b32.xlu1 %v3332_v16, %s2962_s4  ;;  %v2744_v19 = vpop.f32.mrb[43].mxu1  ;;  %v3341_v23 = vpack.c.bf16 %v3332_v16, %v3332_v16 }
0x141a   :  { %v2487_v19 = vld [vmem:[%s3512_s8 + $0x14] sm:$0xf] }
0x148b   :  { %v1403_v20 = vpop.permute.xlu1 %1402 }
0x148c   :  { %1405 = vxpose.xlu0.b32.start.end [1/1] (short) (narrow) %v1403_v20, 8  ;;  %v1751_v20 = vsel %vm366_vm13, %v2487_v19, 0 }
0x14b5   :  { %1601 = vrot.lane.b32.xlu0 %v3332_v16, %s2964_s26 }
0x150c   :  { %v1421_v21 = vpop.trf.xlu0 }
0x150d   :  { %v1438_v54 = vpack.c.bf16 %v1421_v21, %v1421_v21 }
0x150f   :  { %v1443_v22 = vsel %vm366_vm13, %v1438_v54, 0 }
0x1510   :  { %2746 = vmatpush3.bf16.msra.mxu1 %v1443_v22 }
0x1511   :  { %2757 = vmatprep.subr.bf16.mxu1 %v2960_v1 }
0x1513   :  { %2748 = vmatmul.mubr.msk.bf16.vlgmr.msra.gmra.mrb[44].mxu1 %vm362_vm14, %v3341_v23 }
0x1514   :  { %2759 = vmatprep.mubr.msk.bf16.mxu1 %vm2961_vm0, %v2960_v1  ;;  %2758 = vmatpush3.bf16.msra.mxu1 %v1552_v47 }
0x1515   :  { %2769 = vmatprep.subr.bf16.mxu1 %v2960_v1 }
0x1527   :  { %v1602_v37 = vpop.permute.xlu0 %1601 }
0x15e6   :  { %v1479_v24 = vpop.f32.mrb[44].mxu1 }
0x15e7   :  { %v1485_v25 = vmul.f32 0.35355338, %v1479_v24  ;;  %v2749_v26 = vpop.f32.mrb[45].mxu1 }
0x15e8   :  { %v1482_v27 = vpop.f32.mrb[46].mxu1 }
0x15e9   :  { %v2750_v28 = vpop.f32.mrb[47].mxu1  ;;  %v1486_v29 = vsel %vm362_vm14, %v1485_v25, -inf }
0x15ea   :  { %1487 = vmax.xlane.f32.xlu1 %v1486_v29 }
0x15fb   :  { %1499 = vrot.lane.b32.xlu1 %v3341_v23, %s2963_s5 }
0x1677   :  { %v1488_v30 = vpop.xlane.xlu1 %1487 }
0x1678   :  { %v1489_v31 = vsub.f32 %v1485_v25, %v1488_v30 }
0x167a   :  { %v1490_v32 = vmul.f32 1.442695, %v1489_v31 }
0x167b   :  { %v1500_v33 = vpop.permute.xlu1 %1499 }
0x167c   :  { %2899 = vpow2.f32 %v1490_v32  ;;  %v1505_v34 = vsel %vm366_vm13, %v1500_v33, 0 }
0x167d   :  { %2752 = vmatpush3.bf16.msra.mxu0 %v1505_v34 }
0x167e   :  { %2763 = vmatprep.subr.bf16.mxu0 %v2960_v1 }
0x1686   :  { %v2900_v35 = vpop.eup %2899 }
0x1687   :  { %v1492_v36 = vsel %vm362_vm14, %v2900_v35, 0.0 }
0x1688   :  { %1493 = vadd.xlane.f32.xlu1 %v1492_v36 }
0x1699   :  { %1637 = vrot.lane.b32.xlu1 %v3341_v23, %s2965_s21 }
0x16c2   :  { %1604 = vxpose.xlu1.b32.start.end [1/1] (short) (narrow) %v1602_v37, 8 }
0x1715   :  { %v1494_v38 = vpop.xlane.xlu1 %1493 }
0x1716   :  { %2901 = vrcp.f32 %v1494_v38 }
0x1719   :  { %v1638_v42 = vpop.permute.xlu1 %1637 }
0x1720   :  { %v2902_v39 = vpop.eup %2901 }
0x1721   :  { %v1496_v40 = vmul.f32 %v2902_v39, %v2900_v35  ;;  %v2488_v39 = vld [vmem:[%s3512_s8 + $0x18] sm:$0xf] }
0x1723   :  { %v1497_v41 = vpack.c.bf16 %v1496_v40, %v1496_v40  ;;  %v1944_v40 = vsel %vm366_vm13, %v2488_v39, 0 }
0x1725   :  { %2754 = vmatmul.mubr.msk.bf16.vlgmr.msra.gmra.mrb[24].mxu0 %vm362_vm14, %v1497_v41  ;;  %v2499_v41 = vld [vmem:[%s3513_s9 + $0x1] ss:$0 sm:$0xff] }
0x1726   :  { %2765 = vmatprep.mubr.msk.bf16.mxu0 %vm2961_vm0, %v2960_v1 }
0x1742   :  { %v1620_v43 = vpop.trf.xlu1 }
0x1743   :  { %v1636_v44 = vpack.c.bf16 %v1620_v43, %v1620_v43 }
0x1745   :  { %v1643_v45 = vsel %vm366_vm13, %v1636_v44, 0 }
0x1746   :  { %2764 = vmatpush3.bf16.msra.mxu0 %v1643_v45 }
0x1747   :  { %2775 = vmatprep.subr.bf16.mxu0 %v2960_v1 }
0x1749   :  { %2766 = vmatmul.mubr.msk.bf16.vlgmr.msra.gmra.mrb[28].mxu0 %vm362_vm14, %v1638_v42 }
0x174a   :  { %2777 = vmatprep.mubr.msk.bf16.mxu0 %vm2961_vm0, %v2960_v1  ;;  %2776 = vmatpush3.bf16.msra.mxu0 %v1751_v20 }
0x174b   :  { %2787 = vmatprep.subr.bf16.mxu0 %v2960_v1 }
0x17f8   :  { %v1541_v48 = vpop.f32.mrb[24].mxu0 }
0x17f9   :  { %v1547_v49 = vpack.c.bf16 %v1541_v48, %v1541_v48  ;;  %v2755_v50 = vpop.f32.mrb[25].mxu0 }
0x17fa   :  { %v1544_v51 = vpop.f32.mrb[26].mxu0 }
0x17fb   :  { %v2756_v52 = vpop.f32.mrb[27].mxu0  ;;  %2760 = vmatmul.mubr.msk.bf16.vlgmr.msra.gmra.mrb[48].mxu1 %vm362_vm14, %v1547_v49 }
0x17fc   :  { %2771 = vmatprep.mubr.msk.bf16.mxu1 %vm2961_vm0, %v2960_v1 }
0x181c   :  { %v1679_v53 = vpop.f32.mrb[28].mxu0 }
0x181d   :  { %v1685_v55 = vmul.f32 0.35355338, %v1679_v53  ;;  %v2767_v56 = vpop.f32.mrb[29].mxu0 }
0x181e   :  { %v1682_v57 = vpop.f32.mrb[30].mxu0 }
0x181f   :  { %v2768_v58 = vpop.f32.mrb[31].mxu0  ;;  %v1686_v59 = vsel %vm362_vm14, %v1685_v55, -inf }
0x1820   :  { %1687 = vmax.xlane.f32.xlu0 %v1686_v59 }
0x1836   :  { %1794 = vrot.lane.b32.xlu0 %v3332_v16, %s2966_s27 }
0x183a   :  { %1698 = vrot.lane.b32.xlu0 %v3341_v23, %s2967_s28  ;;  %s2973_s28 = smov [#allocation5]  }
0x183e   :  { %1830 = vrot.lane.b32.xlu0 %v3341_v23, %s2970_s3 }
0x18ad   :  { %v1688_v60 = vpop.xlane.xlu0 %1687 }
0x18ae   :  { %v1689_v61 = vsub.f32 %v1685_v55, %v1688_v60 }
0x18b0   :  { %v1690_v62 = vmul.f32 1.442695, %v1689_v61 }
0x18b1   :  { %v1795_v63 = vpop.permute.xlu0 %1794 }
0x18b2   :  { %2903 = vpow2.f32 %v1690_v62  ;;  %1797 = vxpose.xlu0.b32.start.end [1/1] (short) (narrow) %v1795_v63, 8 }
0x18b5   :  { %v1699_v3 = vpop.permute.xlu0 %1698 }
0x18b6   :  { %v1704_v0 = vsel %vm366_vm13, %v1699_v3, 0 }
0x18b7   :  { %2770 = vmatpush3.bf16.msra.mxu1 %v1704_v0 }
0x18b8   :  { %2781 = vmatprep.subr.bf16.mxu1 %v2960_v1 }
0x18b9   :  { %v1831_v10 = vpop.permute.xlu0 %1830 }
0x18bc   :  { %v2904_v2 = vpop.eup %2903 }
0x18bd   :  { %v1692_v4 = vsel %vm362_vm14, %v2904_v2, 0.0 }
0x18be   :  { %1693 = vadd.xlane.f32.xlu1 %v1692_v4 }
0x18ce   :  { %v1588_v5 = vpop.f32.mrb[48].mxu1 }
0x18cf   :  { %v2761_v6 = vpop.f32.mrb[49].mxu1  ;;  %v1600_v42 = vadd.f32 %v2499_v41, %v1588_v5  ;;  %v2870_v41 = vld [vmem:[%s3516_s12 + $0x18] sm:$0xff]  }
0x18d0   :  { %v1591_v7 = vpop.f32.mrb[50].mxu1 }
0x18d1   :  { %v2762_v8 = vpop.f32.mrb[51].mxu1 }
0x1932   :  { %v1813_v11 = vpop.trf.xlu0 }
0x1933   :  { %v1829_v13 = vpack.c.bf16 %v1813_v11, %v1813_v11 }
0x1935   :  { %v1836_v18 = vsel %vm366_vm13, %v1829_v13, 0 }
0x194b   :  { %v1694_v9 = vpop.xlane.xlu1 %1693 }
0x194c   :  { %2905 = vrcp.f32 %v1694_v9 }
0x1956   :  { %v2906_v14 = vpop.eup %2905 }
0x1957   :  { %v1696_v15 = vmul.f32 %v2906_v14, %v2904_v2 }
0x1959   :  { %v1697_v17 = vpack.c.bf16 %v1696_v15, %v1696_v15 }
0x195b   :  { %2772 = vmatmul.mubr.msk.bf16.vlgmr.msra.gmra.mrb[52].mxu1 %vm362_vm14, %v1697_v17 }
0x195c   :  { %2782 = vmatpush3.bf16.msra.mxu1 %v1836_v18  ;;  %2783 = vmatprep.mubr.msk.bf16.mxu1 %vm2961_vm0, %v2960_v1 }
0x195d   :  { %2793 = vmatprep.subr.bf16.mxu1 %v2960_v1 }
0x1963   :  { %2784 = vmatmul.mubr.msk.bf16.vlgmr.msra.gmra.mrb[56].mxu1 %vm362_vm14, %v1831_v10 }
0x1964   :  { %2795 = vmatprep.mubr.msk.bf16.mxu1 %vm2961_vm0, %v2960_v1  ;;  %2794 = vmatpush3.bf16.msra.mxu1 %v1944_v40  ;;  %v2869_v40 = vld [vmem:[%s3516_s12 + $0x10] sm:$0xff]  }
0x1965   :  { %2805 = vmatprep.subr.bf16.mxu1 %v2960_v1 }
0x1a2e   :  { %v1740_v21 = vpop.f32.mrb[52].mxu1 }
0x1a2f   :  { %v1746_v54 = vpack.c.bf16 %v1740_v21, %v1740_v21  ;;  %v2773_v22 = vpop.f32.mrb[53].mxu1 }
0x1a30   :  { %v1743_v24 = vpop.f32.mrb[54].mxu1 }
0x1a31   :  { %v2774_v25 = vpop.f32.mrb[55].mxu1  ;;  %2778 = vmatmul.mubr.msk.bf16.vlgmr.msra.gmra.mrb[32].mxu0 %vm362_vm14, %v1746_v54  ;;  %v2489_v54 = vld [vmem:[%s3512_s8 + $0x1c] sm:$0xf] }
0x1a32   :  { %2789 = vmatprep.mubr.msk.bf16.mxu0 %vm2961_vm0, %v2960_v1  ;;  %v2137_v22 = vsel %vm366_vm13, %v2489_v54, 0 }
0x1a36   :  { %v1872_v26 = vpop.f32.mrb[56].mxu1 }
0x1a37   :  { %v1878_v27 = vmul.f32 0.35355338, %v1872_v26  ;;  %v2785_v28 = vpop.f32.mrb[57].mxu1 }
0x1a38   :  { %v1875_v29 = vpop.f32.mrb[58].mxu1 }
0x1a39   :  { %v2786_v30 = vpop.f32.mrb[59].mxu1  ;;  %v1879_v31 = vsel %vm362_vm14, %v1878_v27, -inf }
0x1a3a   :  { %1880 = vmax.xlane.f32.xlu1 %v1879_v31 }
0x1a4b   :  { %1987 = vrot.lane.b32.xlu1 %v3332_v16, %s2968_s0  ;;  %s2423_s0 = sshll.u32 %s2973_s28, 4  ;;  %s2424_s0 = int_to_ptr.vmem [resolvable:$true] %s2423_s0 }
0x1a4c   :  { %s2937_s9 = scalar_lea.vmem %s2424_s0, 32  ;;  %p2938_p6 = scmp.lt.s32.totalorder %s2424_s0, %s2424_s0 }
0x1a4f   :  { %1891 = vrot.lane.b32.xlu1 %v3341_v23, %s2971_s22 }
0x1a53   :  { %2023 = vrot.lane.b32.xlu1 %v3341_v23, %s2969_s19 }
0x1ac7   :  { %v1881_v32 = vpop.xlane.xlu1 %1880 }
0x1ac8   :  { %v1882_v33 = vsub.f32 %v1878_v27, %v1881_v32 }
0x1aca   :  { %v1883_v34 = vmul.f32 1.442695, %v1882_v33 }
0x1acb   :  { %v1988_v35 = vpop.permute.xlu1 %1987 }
0x1acc   :  { %2907 = vpow2.f32 %v1883_v34  ;;  %1990 = vxpose.xlu1.b32.start.end [1/1] (short) (narrow) %v1988_v35, 8 }
0x1acf   :  { %v1892_v36 = vpop.permute.xlu1 %1891 }
0x1ad0   :  { %v1897_v37 = vsel %vm366_vm13, %v1892_v36, 0 }
0x1ad1   :  { %2788 = vmatpush3.bf16.msra.mxu0 %v1897_v37 }
0x1ad2   :  { %2799 = vmatprep.subr.bf16.mxu0 %v2960_v1 }
0x1ad3   :  { %v2024_v48 = vpop.permute.xlu1 %2023 }
0x1ad6   :  { %v2908_v38 = vpop.eup %2907 }
0x1ad7   :  { %v1885_v16 = vsel %vm362_vm14, %v2908_v38, 0.0 }
0x1ad8   :  { %1886 = vadd.xlane.f32.xlu0 %v1885_v16 }
0x1aea   :  { %2084 = vrot.lane.b32.xlu1 %v3341_v23, %s2972_s29 }
0x1b04   :  { %v1787_v43 = vpop.f32.mrb[32].mxu0 }
0x1b05   :  { %v1793_v44 = vadd.f32 %v1787_v43, %v1600_v42  ;;  %v2779_v45 = vpop.f32.mrb[33].mxu0 }
0x1b06   :  { %v1790_v46 = vpop.f32.mrb[34].mxu0  ;;  %v2511_v45 = vld [vmem:[%s3514_s10 + $0x1] ss:$0 sm:$0xff] }
0x1b07   :  { %v2780_v47 = vpop.f32.mrb[35].mxu0 }
0x1b08   :  { %v2512_v47 = vld [vmem:[%s3515_s11 + $0x1] ss:$0 sm:$0xff] }
0x1b4c   :  { %v2006_v49 = vpop.trf.xlu1 }
0x1b4d   :  { %v2022_v50 = vpack.c.bf16 %v2006_v49, %v2006_v49 }
0x1b4f   :  { %v2029_v53 = vsel %vm366_vm13, %v2022_v50, 0  ;;  %v2871_v50 = vld [vmem:[%s3518_s14 + $0x20] sm:$0xff]  }
0x1b5c   :  { %v2085_v56 = vpop.permute.xlu1 %2084 }
0x1b5d   :  { %v2090_v61 = vsel %vm366_vm13, %v2085_v56, 0 }
0x1b65   :  { %v1887_v23 = vpop.xlane.xlu0 %1886 }
0x1b66   :  { %2909 = vrcp.f32 %v1887_v23 }
0x1b70   :  { %v2910_v51 = vpop.eup %2909 }
0x1b71   :  { %v1889_v52 = vmul.f32 %v2910_v51, %v2908_v38  ;;  %v2872_v51 = vld [vmem:[%s3518_s14 + $0x28] sm:$0xff]  }
0x1b73   :  { %v1890_v55 = vpack.c.bf16 %v1889_v52, %v1889_v52  ;;  %v2873_v52 = vld [vmem:[%s3518_s14 + $0x30] sm:$0xff]  }
0x1b75   :  { %2790 = vmatmul.mubr.msk.bf16.vlgmr.msra.gmra.mrb[36].mxu0 %vm362_vm14, %v1890_v55  ;;  %v2518_v55 = vld [vmem:[%s3517_s13 + $0x1] ss:$0 sm:$0xff] }
0x1b76   :  { %2800 = vmatpush3.bf16.msra.mxu0 %v2029_v53  ;;  %2801 = vmatprep.mubr.msk.bf16.mxu0 %vm2961_vm0, %v2960_v1  ;;  %v2874_v53 = vld [vmem:[%s3518_s14 + $0x38] sm:$0xff]  }
0x1b77   :  { %2811 = vmatprep.subr.bf16.mxu0 %v2960_v1 }
0x1b7d   :  { %2802 = vmatmul.mubr.msk.bf16.vlgmr.msra.gmra.mrb[40].mxu0 %vm362_vm14, %v2024_v48 }
0x1b7e   :  { %2813 = vmatprep.mubr.msk.bf16.mxu0 %vm2961_vm0, %v2960_v1  ;;  %2812 = vmatpush3.bf16.msra.mxu0 %v2137_v22 }
0x1b7f   :  { %2825 = vmatprep.subr.bf16.mxu0 %v2960_v1 }
0x1c48   :  { %v1933_v57 = vpop.f32.mrb[36].mxu0 }
0x1c49   :  { %v1939_v58 = vpack.c.bf16 %v1933_v57, %v1933_v57  ;;  %v2791_v59 = vpop.f32.mrb[37].mxu0 }
0x1c4a   :  { %v1936_v60 = vpop.f32.mrb[38].mxu0 }
0x1c4b   :  { %v2792_v62 = vpop.f32.mrb[39].mxu0  ;;  %2796 = vmatmul.mubr.msk.bf16.vlgmr.msra.gmra.mrb[60].mxu1 %vm362_vm14, %v1939_v58 }
0x1c4c   :  { %2806 = vmatpush3.bf16.msra.mxu1 %v2090_v61  ;;  %2807 = vmatprep.mubr.msk.bf16.mxu1 %vm2961_vm0, %v2960_v1 }
0x1c4d   :  { %2817 = vmatprep.subr.bf16.mxu1 %v2960_v1 }
0x1c50   :  { %v2065_v63 = vpop.f32.mrb[40].mxu0 }
0x1c51   :  { %v2071_v3 = vmul.f32 0.35355338, %v2065_v63  ;;  %v2803_v0 = vpop.f32.mrb[41].mxu0 }
0x1c52   :  { %v2068_v2 = vpop.f32.mrb[42].mxu0 }
0x1c53   :  { %v2804_v4 = vpop.f32.mrb[43].mxu0  ;;  %v2072_v5 = vsel %vm362_vm14, %v2071_v3, -inf }
0x1c54   :  { %2073 = vmax.xlane.f32.xlu0 %v2072_v5 }
0x1ce1   :  { %v2074_v6 = vpop.xlane.xlu0 %2073 }
0x1ce2   :  { %v2075_v7 = vsub.f32 %v2071_v3, %v2074_v6 }
0x1ce4   :  { %v2076_v8 = vmul.f32 1.442695, %v2075_v7  ;;  %v2531_v7 = vld [vmem:[%s3519_s15 + $0x1] ss:$0 sm:$0xff] }
0x1ce6   :  { %2911 = vpow2.f32 %v2076_v8 }
0x1cf0   :  { %v2912_v9 = vpop.eup %2911 }
0x1cf1   :  { %v2078_v10 = vsel %vm362_vm14, %v2912_v9, 0.0 }
0x1cf2   :  { %2079 = vadd.xlane.f32.xlu0 %v2078_v10 }
0x1d1e   :  { %v1980_v11 = vpop.f32.mrb[60].mxu1 }
0x1d1f   :  { %v1986_v13 = vadd.f32 %v1980_v11, %v1793_v44  ;;  %v2797_v14 = vpop.f32.mrb[61].mxu1 }
0x1d20   :  { %v1983_v15 = vpop.f32.mrb[62].mxu1 }
0x1d21   :  { %v2798_v17 = vpop.f32.mrb[63].mxu1 }
0x1d7f   :  { %v2080_v18 = vpop.xlane.xlu0 %2079 }
0x1d80   :  { %2913 = vrcp.f32 %v2080_v18 }
0x1d8a   :  { %v2914_v19 = vpop.eup %2913 }
0x1d8b   :  { %v2082_v20 = vmul.f32 %v2914_v19, %v2912_v9 }
0x1d8d   :  { %v2083_v21 = vpack.c.bf16 %v2082_v20, %v2082_v20 }
0x1d8f   :  { %2808 = vmatmul.mubr.msk.bf16.vlgmr.msra.gmra.mrb[64].mxu1 %vm362_vm14, %v2083_v21 }
0x1d90   :  { %2821 = vmatprep.mubr.msk.bf16.mxu1 %vm2961_vm0, %v2960_v1  ;;  %2818 = vmatpush3.bf16.msra.mxu1 %v2869_v40 }
0x1d91   :  { %2819 = vmatprep.subr.bf16.mxu1 %v2960_v1 }
0x1d94   :  { %2820 = vmatpush3.bf16.msra.mxu1 %v2870_v41 }
0x1e62   :  { %v2126_v24 = vpop.f32.mrb[64].mxu1 }
0x1e63   :  { %v2132_v25 = vpack.c.bf16 %v2126_v24, %v2126_v24  ;;  %v2809_v26 = vpop.f32.mrb[65].mxu1 }
0x1e64   :  { %v2129_v27 = vpop.f32.mrb[66].mxu1  ;;  %v2539_v26 = vld [vmem:[%s3520_s16 + $0x1] ss:$0 sm:$0xff]  ;;  %s2933_s16 = scalar_lea.vmem %s2424_s0, 16 }
0x1e65   :  { %v2810_v28 = vpop.f32.mrb[67].mxu1  ;;  %2814 = vmatmul.mubr.msk.bf16.vlgmr.msra.gmra.mrb[44].mxu0 %vm362_vm14, %v2132_v25  ;;  %p2934_p5 = scmp.ne.s32.totalorder %s2424_s0, %s2933_s16  ;;  %p2939_p7 = scmp.lt.s32.totalorder %s2937_s9, %s2933_s16 }
0x1e66   :  { %2833 = vmatprep.mubr.msk.bf16.mxu0 %vm2961_vm0, %v2960_v1  ;;  %2826 = vmatpush3.bf16.msra.mxu0 %v2871_v50  ;;  %v2540_v28 = vld [vmem:[%s3521_s17 + $0x1] ss:$0 sm:$0xff]  ;;  %vm2415_vm0 = vcmask 253952  }
0x1e67   :  { %2827 = vmatprep.subr.bf16.mxu0 %v2960_v1  ;;  %p2940_p8 = por %p2939_p7, %p2938_p6 }
0x1e69   :  { %p2941_p9 = pnand %p2940_p8, %p2934_p5 }
0x1e6a   :  { %2828 = vmatpush3.bf16.msra.mxu0 %v2872_v51 }
0x1e6b   :  { %2829 = vmatprep.subr.bf16.mxu0 %v2960_v1 }
0x1e6e   :  { %2830 = vmatpush3.bf16.msra.mxu0 %v2873_v52 }
0x1e6f   :  { %2831 = vmatprep.subr.bf16.mxu0 %v2960_v1 }
0x1e72   :  { %2832 = vmatpush3.bf16.msra.mxu0 %v2874_v53 }
0x1f38   :  { %v2173_v29 = vpop.f32.mrb[44].mxu0 }
0x1f39   :  { %v2179_v30 = vadd.f32 %v2173_v29, %v1986_v13  ;;  %v2815_v31 = vpop.f32.mrb[45].mxu0 }
0x1f3a   :  { %v2176_v32 = vpop.f32.mrb[46].mxu0 }
0x1f3b   :  { %v2816_v33 = vpop.f32.mrb[47].mxu0  ;;  %v2180_v34 = vadd.f32 %v2179_v30, %v3322_v12 }
0x1f3d   :  { %v2185_v35 = vsel %vm223_vm12, %v2180_v34, 0.0 }
0x1f3e   :  { %2186 = vadd.xlane.f32.xlu0 %v2185_v35 }
0x1fcb   :  { %v2187_v36 = vpop.xlane.xlu0 %2186 }
0x1fcc   :  { %v2188_v37 = vmul.f32 0.03125, %v2187_v36 }
0x1fce   :  { %v2189_v38 = vsub.f32 %v2180_v34, %v2188_v37 }
0x1fd0   :  { %v2190_v16 = vmul.f32 %v2189_v38, %v2189_v38 }
0x1fd2   :  { %v2191_v39 = vsel %vm223_vm12, %v2190_v16, 0.0 }
0x1fd3   :  { %2192 = vadd.xlane.f32.xlu0 %v2191_v39 }
0x2060   :  { %v2193_v12 = vpop.xlane.xlu0 %2192 }
0x2061   :  { %v2194_v42 = vmul.f32 0.03125, %v2193_v12 }
0x2063   :  { %v2195_v43 = vadd.f32 1e-12, %v2194_v42 }
0x2065   :  { %2915 = vrsqrt.f32 %v2195_v43 }
0x206f   :  { %v2916_v44 = vpop.eup %2915 }
0x2070   :  { %v2197_v46 = vmul.f32 %v2916_v44, %v2189_v38 }
0x2072   :  { %v2204_v23 = vmul.f32 %v2511_v45, %v2197_v46 }
0x2074   :  { %v2211_v48 = vadd.f32 %v2512_v47, %v2204_v23 }
0x2076   :  { %v2217_v49 = vpack.c.bf16 %v2211_v48, %v2211_v48 }
0x2078   :  { %2822 = vmatmul.mubr.msk.bf16.vlgmr.msra.gmra.mrb[68].mxu1 %vm223_vm12, %v2217_v49 }
0x214b   :  { %v2275_v56 = vpop.f32.mrb[68].mxu1 }
0x214c   :  { %v2276_v57 = vadd.f32 %v2518_v55, %v2275_v56  ;;  %v2823_v58 = vpop.f32.mrb[69].mxu1 }
0x214d   :  { %v2278_v59 = vpop.f32.mrb[70].mxu1 }
0x214e   :  { %v2281_v60 = vmul.f32 %v2276_v57, %v2276_v57  ;;  %v2824_v61 = vpop.f32.mrb[71].mxu1 }
0x2150   :  { %v2282_v62 = vmul.f32 %v2281_v60, %v2276_v57 }
0x2152   :  { %v2283_v63 = vmul.f32 0.044715, %v2282_v62 }
0x2154   :  { %v2284_v3 = vadd.f32 %v2283_v63, %v2276_v57 }
0x2156   :  { %v2285_v0 = vmul.f32 0.7978846, %v2284_v3 }
0x2158   :  { %2917 = vtanh.f32 %v2285_v0 }
0x2162   :  { %v2918_v1 = vpop.eup %2917 }
0x2163   :  { %v2287_v2 = vadd.f32 1.0, %v2918_v1 }
0x2165   :  { %v2288_v4 = vmul.f32 0.5, %v2287_v2 }
0x2167   :  { %v2289_v5 = vmul.f32 %v2288_v4, %v2276_v57 }
0x2169   :  { %v2299_v6 = vpack.c.bf16 %v2289_v5, %v2289_v5 }
0x216b   :  { %2834 = vmatmul.mubr.msk.bf16.vlgmr.msra.gmra.mrb[48].mxu0 %vm1251_vm15, %v2299_v6 }
0x223e   :  { %v2369_v8 = vpop.f32.mrb[48].mxu0 }
0x223f   :  { %v2370_v9 = vadd.f32 %v2531_v7, %v2369_v8  ;;  %v2835_v10 = vpop.f32.mrb[49].mxu0 }
0x2240   :  { %v2372_v11 = vpop.f32.mrb[50].mxu0 }
0x2241   :  { %v2836_v13 = vpop.f32.mrb[51].mxu0  ;;  %v2375_v14 = vadd.f32 %v2370_v9, %v2211_v48 }
0x2243   :  { %v2380_v15 = vsel %vm223_vm12, %v2375_v14, 0.0 }
0x2244   :  { %2381 = vadd.xlane.f32.xlu0 %v2380_v15 }
0x22d1   :  { %v2382_v17 = vpop.xlane.xlu0 %2381 }
0x22d2   :  { %v2383_v18 = vmul.f32 0.03125, %v2382_v17 }
0x22d4   :  { %v2384_v19 = vsub.f32 %v2375_v14, %v2383_v18 }
0x22d6   :  { %v2385_v20 = vmul.f32 %v2384_v19, %v2384_v19 }
0x22d8   :  { %v2386_v21 = vsel %vm223_vm12, %v2385_v20, 0.0 }
0x22d9   :  { %2387 = vadd.xlane.f32.xlu0 %v2386_v21 }
0x2366   :  { %v2388_v54 = vpop.xlane.xlu0 %2387 }
0x2367   :  { %v2389_v22 = vmul.f32 0.03125, %v2388_v54 }
0x2369   :  { %v2390_v24 = vadd.f32 1e-12, %v2389_v22 }
0x236b   :  { %2919 = vrsqrt.f32 %v2390_v24 }
0x2375   :  { %v2920_v25 = vpop.eup %2919 }
0x2376   :  { %v2392_v27 = vmul.f32 %v2920_v25, %v2384_v19 }
0x2378   :  { %v2399_v29 = vmul.f32 %v2539_v26, %v2392_v27 }
0x237a   :  { %v2406_v30 = vadd.f32 %v2540_v28, %v2399_v29 }
0x237c   :  { %v2407_v31 = vsel %vm223_vm12, %v2406_v30, 0.0 }
0x237d   :  { %v2408_v32 = vrot.slane %v2407_v31, 4 }
0x237f   :  { %v2409_v33 = vadd.f32 %v2408_v32, %v2407_v31 }
0x2381   :  { %v2410_v34 = vrot.slane %v2409_v33, 2 }
0x2383   :  { %v2411_v35 = vadd.f32 %v2410_v34, %v2409_v33 }
0x2385   :  { %v2412_v36 = vrot.slane %v2411_v35, 1 }
0x2387   :  { %v2413_v37 = vadd.f32 %v2412_v36, %v2411_v35 }
0x2389   :  { %v2414_v38 = vmul.f32 0.125, %v2413_v37 }
0x238b   :  { %2416 = vst.msk [vmem:[#allocation5] sm:$0x1] %vm2415_vm0, %v2414_v38 }
0x238c   :  { %2944 = shalt.err (!%p2941_p9)
}
0x238d   :  { %s2945_s8 = scalar_lea.hbm %s3522_s18, 16 }
0x238e   :  { %p2946_p10 = scmp.ne.s32.totalorder %s3522_s18, %s2945_s8  ;;  %p2949_p11 = scmp.lt.u32.totalorder %s2945_s8, %s3522_s18 }
0x2390   :  { %p2951_p12 = pnand %p2949_p11, %p2946_p10 }
0x2392   :  { %2954 = shalt.err (!%p2951_p12)
}
0x2393   :  { %2426 = dma.vmem_to_hbm [thread:$0]  %s2424_s0, 16, %s3522_s18, [#allocation3]  }
0x2394   :  { %2957 = dma.done.wait [#allocation3], 16  }
0x2395   :  { %2958 = vsyncadd [#allocation3], 4294967280 }
0x2396   :  { %2430 = vsyncpa [#allocation3], 1 }
0x2397   :  { %2431 = vsyncpa [#allocation4], 1 }

</bundles_post_ra>
